<compile_context>
chip_gen: v6e
topology: v6e:2x2x1
jax: 0.10.0
libtpu: 0.0.40
codegen_flags: <defaults>
</compile_context>

<pallas_src>
import functools
import numpy as np
import jax
import jax.numpy as jnp
from jax.experimental import pallas as pl
from jax.experimental.pallas import tpu as pltpu


def _round_up(x, m):
    return ((x + m - 1) // m) * m


# ------------------------------ Fused kernel ------------------------------ #
def _make_fused_kernel(*, n_conv, n_fc, shifts, conv_cins, batch, hw, c_last):
    k2 = len(shifts)

    def kernel(*refs):
        x_ref, mask_ref = refs[0], refs[1]
        conv_refs = refs[2:2 + 2 * n_conv]
        fc_refs = refs[2 + 2 * n_conv:2 + 2 * n_conv + 2 * n_fc]
        o_ref = refs[2 + 2 * n_conv + 2 * n_fc]
        stack_ref = refs[-1]                    # (K_max, P) f32 VMEM scratch

        masks = mask_ref[...]                   # (k2, P) f32 of {0,1}
        act = x_ref[...]                        # (Cin0_pad, P) f32

        # ---- conv layers (encoder + decoder-as-conv), all 'same' convs ----
        # Build the stacked (k2*Cin, P) operand in VMEM, then ONE MXU matmul.
        for l in range(n_conv):
            w_ref = conv_refs[2 * l]            # (Cout, k2*Cin) bf16
            b_ref = conv_refs[2 * l + 1]        # (Cout, 1) f32
            cin = conv_cins[l]
            for kk, s in enumerate(shifts):
                rolled = act if s == 0 else pltpu.roll(act, shift=s, axis=1)
                # zero-padding taps; write offsets kk*cin are 8-aligned.
                stack_ref[kk * cin:(kk + 1) * cin, :] = (
                    rolled * masks[kk:kk + 1, :])
            stacked = stack_ref[0:k2 * cin, :].astype(jnp.bfloat16)
            acc = jnp.dot(w_ref[...], stacked,
                          preferred_element_type=jnp.float32)
            act = jnp.maximum(acc + b_ref[...], 0.0)      # bias + ReLU (f32)

        # ---- NCHW flatten fused into the first Linear:
        #   out[b,n] = sum_{c,hw} act[c, b*HW+hw] * Wfc[n, c*HW+hw]
        # via a single batched-over-c dot_general + tiny sum over c.
        w3_ref, b3_ref = fc_refs[0], fc_refs[1]   # (C,HW,N) bf16, (1,N) f32
        act3 = act.reshape(c_last, batch, hw).astype(jnp.bfloat16)
        part = jax.lax.dot_general(
            act3, w3_ref[...],
            dimension_numbers=(((2,), (1,)), ((0,), (0,))),
            preferred_element_type=jnp.float32)           # (C, B, N)
        h = jnp.sum(part, axis=0) + b3_ref[...]           # (B, N)

        # ---- remaining Linear layers (none in the default config) ----
        for l in range(1, n_fc):
            fw_ref, fb_ref = fc_refs[2 * l], fc_refs[2 * l + 1]
            h = jnp.dot(h.astype(jnp.bfloat16), fw_ref[...],
                        preferred_element_type=jnp.float32) + fb_ref[...]

        o_ref[...] = h

    return kernel


def _fused_pallas_forward(x_cp, masks, conv_params, fc_params, *, shifts,
                          batch, hw):
    k2 = len(shifts)
    _, p = x_cp.shape
    n_conv = len(conv_params)
    n_fc = len(fc_params)
    assert n_fc >= 1  # TODO(synk): no-FC path (fully_input=None) not fused.
    conv_cins = tuple(int(w.shape[1]) // k2 for w, _ in conv_params)
    k_max = max(int(w.shape[1]) for w, _ in conv_params)
    c_last = int(fc_params[0][0].shape[0])
    n_out_pad = int(fc_params[-1][0].shape[-1])

    kernel = _make_fused_kernel(n_conv=n_conv, n_fc=n_fc, shifts=shifts,
                                conv_cins=conv_cins, batch=batch, hw=hw,
                                c_last=c_last)

    operands = [x_cp, masks]
    in_specs = [pl.BlockSpec(x_cp.shape, lambda i: (0, 0)),
                pl.BlockSpec(masks.shape, lambda i: (0, 0))]
    for w, b in conv_params:
        operands += [w, b]
        in_specs += [pl.BlockSpec(w.shape, lambda i: (0, 0)),
                     pl.BlockSpec(b.shape, lambda i: (0, 0))]
    for w, b in fc_params:
        operands += [w, b]
        if w.ndim == 3:
            in_specs += [pl.BlockSpec(w.shape, lambda i: (0, 0, 0))]
        else:
            in_specs += [pl.BlockSpec(w.shape, lambda i: (0, 0))]
        in_specs += [pl.BlockSpec(b.shape, lambda i: (0, 0))]

    return pl.pallas_call(
        kernel,
        out_shape=jax.ShapeDtypeStruct((batch, n_out_pad), jnp.float32),
        grid=(1,),
        in_specs=in_specs,
        out_specs=pl.BlockSpec((batch, n_out_pad), lambda i: (0, 0)),
        scratch_shapes=[pltpu.VMEM((k_max, p), jnp.float32)],
        compiler_params=pltpu.CompilerParams(
            dimension_semantics=("arbitrary",)),
    )(*operands)


@functools.partial(jax.jit, static_argnames=("shifts", "n_out"))
def model_forward(x, masks, conv_params, fc_params, shifts, n_out):
    """x: (B, C, H, W) NCHW.  Returns (B, n_out)."""
    B, C, H, W = x.shape
    # Single small layout transpose so the pixel axis (B*H*W) is lane-dense.
    x_cp = jnp.transpose(x, (1, 0, 2, 3)).reshape(C, B * H * W)
    # Zero-pad input channels so the first layer's stacked writes are aligned.
    cin0_pad = conv_params[0][0].shape[1] // len(shifts)
    if cin0_pad > C:
        x_cp = jnp.pad(x_cp, ((0, cin0_pad - C), (0, 0)))
    out_pad = _fused_pallas_forward(x_cp, masks, conv_params, fc_params,
                                    shifts=shifts, batch=B, hw=H * W)
    return out_pad[:, :n_out]


# ------------------- Static conv shift / mask construction ----------------- #
def conv_shifts_and_masks(batch, H, W, k, pad):
    """Lane-roll amounts + boundary masks for a 'same' k x k stride-1 conv on
    activations stored as (C, B*H*W)."""
    P = batch * H * W
    hw = np.arange(P) % (H * W)
    y, x = hw // W, hw % W
    shifts, masks = [], []
    for i in range(k):
        for j in range(k):
            dy, dx = i - pad, j - pad
            shifts.append(int((-(dy * W + dx)) % P))
            valid = (y + dy >= 0) & (y + dy < H) & (x + dx >= 0) & (x + dx < W)
            masks.append(valid.astype(np.float32))
    return tuple(shifts), jnp.asarray(np.stack(masks))


# --------------------------- Parameter handling ---------------------------- #
def orthogonal_init(key, shape):
    """Mimics nn.init.orthogonal_ (QR of a normal matrix), deterministic."""
    rows = shape[0]
    cols = int(np.prod(shape[1:]))
    a = jax.random.normal(key, (max(rows, cols), min(rows, cols)), jnp.float32)
    q, r = jnp.linalg.qr(a)
    q = q * jnp.sign(jnp.diag(r))
    if rows < cols:
        q = q.T
    return q.reshape(shape)


def linear_init(key, n_out, n_in):
    kw, kb = jax.random.split(key)
    bound = 1.0 / np.sqrt(n_in)
    w = jax.random.uniform(kw, (n_out, n_in), jnp.float32, -bound, bound)
    b = jax.random.uniform(kb, (n_out,), jnp.float32, -bound, bound)
    return w, b


def build_params(key, enc_in, enc_hidden, enc_k, dec_in, dec_hidden, dec_k,
                 fc_in, fc_hidden):
    """PyTorch-layout f32 params (Conv2d OIHW, ConvTranspose2d IOHW, Linear)."""
    params = {"enc": [], "dec": [], "fc": []}
    cin = enc_in
    for cout, k in zip(enc_hidden, enc_k):
        key, sub = jax.random.split(key)
        w = orthogonal_init(sub, (cout, cin, k, k))
        params["enc"].append((w, jnp.zeros((cout,), jnp.float32)))
        cin = cout
    cin = dec_in
    for cout, k in zip(dec_hidden, dec_k):
        key, sub = jax.random.split(key)
        w = orthogonal_init(sub, (cin, cout, k, k))
        params["dec"].append((w, jnp.zeros((cout,), jnp.float32)))
        cin = cout
    nin = fc_in
    for nout in fc_hidden:
        key, sub = jax.random.split(key)
        params["fc"].append(linear_init(sub, nout, nin))
        nin = nout
    return params


def _stack_conv_weight(w, cin_pad):
    """(Cout, Cin, k, k) f32 -> (Cout, k*k*Cin_pad) bf16, rows tap-major so
    row kk*Cin_pad+cin matches the kernel's stacked operand layout."""
    cout, cin, kh, kw = w.shape
    if cin_pad > cin:
        w = jnp.pad(w, ((0, 0), (0, cin_pad - cin), (0, 0), (0, 0)))
    w = jnp.transpose(w, (0, 2, 3, 1)).reshape(cout, kh * kw * cin_pad)
    return w.astype(jnp.bfloat16)


def prepare_kernel_params(params, *, img_hw):
    """One-time rearrangement: decoder flip, tap stacking, bf16, FC reshape."""
    conv = []
    first = True
    for w, b in params["enc"]:
        cin = w.shape[1]
        cin_pad = _round_up(cin, 8) if first else cin
        conv.append((_stack_conv_weight(w, cin_pad), b.reshape(-1, 1)))
        first = False
    for w, b in params["dec"]:
        # ConvTranspose2d(stride=1) == Conv2d with flipped, in/out-swapped weight.
        w_eq = jnp.transpose(jnp.flip(w, axis=(2, 3)), (1, 0, 2, 3))
        cin = w_eq.shape[1]
        cin_pad = _round_up(cin, 8) if first else cin
        conv.append((_stack_conv_weight(w_eq, cin_pad), b.reshape(-1, 1)))
        first = False
    c_last = params["dec"][-1][0].shape[1]

    fc = []
    n_fc = len(params["fc"])
    for idx, (w, b) in enumerate(params["fc"]):
        n_out, _ = w.shape
        if idx == n_fc - 1:
            # Lane-pad the final output to a multiple of 128 (unmasked vst).
            n_pad = _round_up(n_out, 128)
            w = jnp.pad(w, ((0, n_pad - n_out), (0, 0)))
            b = jnp.pad(b, (0, n_pad - n_out))
        if idx == 0:
            # (N, C_last*HW) -> (C_last, HW, N): fuses the NCHW flatten into
            # the first Linear (kernel contracts over (c, hw)).
            w_r = w.T.reshape(c_last, img_hw, w.shape[0]).astype(jnp.bfloat16)
        else:
            w_r = w.T.astype(jnp.bfloat16)
        fc.append((w_r, b.reshape(1, -1)))
    return {"conv": conv, "fc": fc}


# ------------------------- Pure-JAX f32 reference -------------------------- #
def reference_forward(x, params):
    out = x
    for w, b in params["enc"]:
        pad = (w.shape[2] - 1) // 2
        out = jax.lax.conv_general_dilated(
            out, w, (1, 1), ((pad, pad), (pad, pad)),
            dimension_numbers=("NCHW", "OIHW", "NCHW"))
        out = jax.nn.relu(out + b.reshape(1, -1, 1, 1))
    for w, b in params["dec"]:
        pad = (w.shape[2] - 1) // 2
        w_eq = jnp.transpose(jnp.flip(w, axis=(2, 3)), (1, 0, 2, 3))
        out = jax.lax.conv_general_dilated(
            out, w_eq, (1, 1), ((pad, pad), (pad, pad)),
            dimension_numbers=("NCHW", "OIHW", "NCHW"))
        out = jax.nn.relu(out + b.reshape(1, -1, 1, 1))
    out = out.reshape(out.shape[0], -1)
    for w, b in params["fc"]:
        out = out @ w.T + b
    return out


# ----------------------------------- Main ---------------------------------- #
if __name__ == "__main__":
    # Config consistent with the PyTorch module:
    #   encoder: in=4, hidden=[8,16], kernel=3, stride=1, padding=1, 2 layers
    #   decoder: in=16, hidden=[8,4], kernel=3, stride=1, padding=1, 2 layers
    #   fully:   in=4*16*16=1024, hidden=[32], 1 layer; batch_norm=False
    B, C, H, W = 2, 4, 16, 16
    enc_hidden, enc_k, enc_stride, enc_pad = [8, 16], [3, 3], [1, 1], [1, 1]
    dec_in, dec_hidden, dec_k = 16, [8, 4], [3, 3]
    dec_stride, dec_pad = [1, 1], [1, 1]
    fc_in, fc_hidden = 4 * H * W, [32]

    # The fused kernel assumes spatial-preserving ('same') stride-1 convs.
    ksize = enc_k[0]
    assert all(k == ksize for k in enc_k + dec_k)
    assert all(s == 1 for s in enc_stride + dec_stride)
    assert all(p == (ksize - 1) // 2 for p in enc_pad + dec_pad)
    # TODO(synk): strided / non-'same' conv configs, batch_norm=True and the
    # no-FC path are not covered by the fused kernel (defaults don't use them).

    key = jax.random.PRNGKey(0)
    kx, kp = jax.random.split(key)
    x = jax.random.normal(kx, (B, C, H, W), jnp.float32)
    params = build_params(kp, C, enc_hidden, enc_k, dec_in, dec_hidden, dec_k,
                          fc_in, fc_hidden)

    # One-time (outside jit) weight rearrangement + static shifts/masks.
    kparams = prepare_kernel_params(params, img_hw=H * W)
    shifts, masks = conv_shifts_and_masks(B, H, W, ksize, (ksize - 1) // 2)

    out = model_forward(x, masks, kparams["conv"], kparams["fc"],
                        shifts=shifts, n_out=fc_hidden[-1])
    jax.block_until_ready(out)
    assert out.shape == (B, fc_hidden[-1]), out.shape

    # Numerical sanity check vs a pure-JAX f32 reference (loose tol for bf16).
    ref = reference_forward(x, params)
    err = float(jnp.max(jnp.abs(out - ref)))
    scale = max(1.0, float(jnp.max(jnp.abs(ref))))
    assert err < 0.1 * scale, f"max abs err {err} vs scale {scale}"
    print("KERNEL_OK")
</pallas_src>

<mosaic_0001>
module attributes {stable_mosaic.version = 11 : i64} {
  func.func @kernel(%arg0: i32, %arg1: memref<8x512xf32, #tpu.memory_space<vmem>>, %arg2: memref<9x512xf32, #tpu.memory_space<vmem>>, %arg3: memref<8x72xbf16, #tpu.memory_space<vmem>>, %arg4: memref<8x1xf32, #tpu.memory_space<vmem>>, %arg5: memref<16x72xbf16, #tpu.memory_space<vmem>>, %arg6: memref<16x1xf32, #tpu.memory_space<vmem>>, %arg7: memref<8x144xbf16, #tpu.memory_space<vmem>>, %arg8: memref<8x1xf32, #tpu.memory_space<vmem>>, %arg9: memref<4x72xbf16, #tpu.memory_space<vmem>>, %arg10: memref<4x1xf32, #tpu.memory_space<vmem>>, %arg11: memref<4x256x128xbf16, #tpu.memory_space<vmem>>, %arg12: memref<1x128xf32, #tpu.memory_space<vmem>>, %arg13: memref<2x128xf32, #tpu.memory_space<vmem>>, %arg14: memref<144x512xf32, #tpu.memory_space<vmem>>) attributes {dimension_semantics = [#tpu.dimension_semantics<arbitrary>], iteration_bounds = array<i64: 1>, scalar_prefetch = 0 : i64, scratch_operands = 1 : i64, tpu.core_type = #tpu.core_type<tc>, window_params = [{pipeline_mode = #tpu.pipeline_mode<synchronous>, transform_indices = @transform_0, window_bounds = array<i64: 8, 512>}, {pipeline_mode = #tpu.pipeline_mode<synchronous>, transform_indices = @transform_1, window_bounds = array<i64: 9, 512>}, {pipeline_mode = #tpu.pipeline_mode<synchronous>, transform_indices = @transform_2, window_bounds = array<i64: 8, 72>}, {pipeline_mode = #tpu.pipeline_mode<synchronous>, transform_indices = @transform_3, window_bounds = array<i64: 8, 1>}, {pipeline_mode = #tpu.pipeline_mode<synchronous>, transform_indices = @transform_4, window_bounds = array<i64: 16, 72>}, {pipeline_mode = #tpu.pipeline_mode<synchronous>, transform_indices = @transform_5, window_bounds = array<i64: 16, 1>}, {pipeline_mode = #tpu.pipeline_mode<synchronous>, transform_indices = @transform_6, window_bounds = array<i64: 8, 144>}, {pipeline_mode = #tpu.pipeline_mode<synchronous>, transform_indices = @transform_7, window_bounds = array<i64: 8, 1>}, {pipeline_mode = #tpu.pipeline_mode<synchronous>, transform_indices = @transform_8, window_bounds = array<i64: 4, 72>}, {pipeline_mode = #tpu.pipeline_mode<synchronous>, transform_indices = @transform_9, window_bounds = array<i64: 4, 1>}, {pipeline_mode = #tpu.pipeline_mode<synchronous>, transform_indices = @transform_10, window_bounds = array<i64: 4, 256, 128>}, {pipeline_mode = #tpu.pipeline_mode<synchronous>, transform_indices = @transform_11, window_bounds = array<i64: 1, 128>}, {pipeline_mode = #tpu.pipeline_mode<synchronous>, transform_indices = @transform_12, window_bounds = array<i64: 2, 128>}]} {
    %c0 = arith.constant 0 : index
    %c0_0 = arith.constant 0 : index
    %0 = vector.load %arg2[%c0, %c0_0] : memref<9x512xf32, #tpu.memory_space<vmem>>, vector<9x512xf32>
    %c0_1 = arith.constant 0 : index
    %c0_2 = arith.constant 0 : index
    %1 = vector.load %arg1[%c0_1, %c0_2] : memref<8x512xf32, #tpu.memory_space<vmem>>, vector<8x512xf32>
    %c17_i32 = arith.constant 17 : i32
    %2 = tpu.dynamic_rotate %1 by %c17_i32 dim 1 : vector<8x512xf32>, i32 -> vector<8x512xf32>
    %3 = vector.extract_strided_slice %0 {offsets = [0, 0], sizes = [1, 512], strides = [1, 1]} : vector<9x512xf32> to vector<1x512xf32>
    %4 = vector.broadcast %3 : vector<1x512xf32> to vector<8x512xf32>
    %5 = arith.mulf %2, %4 : vector<8x512xf32>
    %c0_3 = arith.constant 0 : index
    %c0_4 = arith.constant 0 : index
    %6 = vector.load %arg14[%c0_3, %c0_4] : memref<144x512xf32, #tpu.memory_space<vmem>>, vector<8x512xf32>
    tpu.vector_store %arg14[%c0_3, %c0_4], %5 {strides = array<i32>} : memref<144x512xf32, #tpu.memory_space<vmem>>, vector<8x512xf32>,
    %c16_i32 = arith.constant 16 : i32
    %7 = tpu.dynamic_rotate %1 by %c16_i32 dim 1 : vector<8x512xf32>, i32 -> vector<8x512xf32>
    %8 = vector.extract_strided_slice %0 {offsets = [1, 0], sizes = [1, 512], strides = [1, 1]} : vector<9x512xf32> to vector<1x512xf32>
    %9 = vector.broadcast %8 : vector<1x512xf32> to vector<8x512xf32>
    %10 = arith.mulf %7, %9 : vector<8x512xf32>
    %c8 = arith.constant 8 : index
    %c0_5 = arith.constant 0 : index
    %11 = vector.load %arg14[%c8, %c0_5] : memref<144x512xf32, #tpu.memory_space<vmem>>, vector<8x512xf32>
    tpu.vector_store %arg14[%c8, %c0_5], %10 {strides = array<i32>} : memref<144x512xf32, #tpu.memory_space<vmem>>, vector<8x512xf32>,
    %c15_i32 = arith.constant 15 : i32
    %12 = tpu.dynamic_rotate %1 by %c15_i32 dim 1 : vector<8x512xf32>, i32 -> vector<8x512xf32>
    %13 = vector.extract_strided_slice %0 {offsets = [2, 0], sizes = [1, 512], strides = [1, 1]} : vector<9x512xf32> to vector<1x512xf32>
    %14 = vector.broadcast %13 : vector<1x512xf32> to vector<8x512xf32>
    %15 = arith.mulf %12, %14 : vector<8x512xf32>
    %c16 = arith.constant 16 : index
    %c0_6 = arith.constant 0 : index
    %16 = vector.load %arg14[%c16, %c0_6] : memref<144x512xf32, #tpu.memory_space<vmem>>, vector<8x512xf32>
    tpu.vector_store %arg14[%c16, %c0_6], %15 {strides = array<i32>} : memref<144x512xf32, #tpu.memory_space<vmem>>, vector<8x512xf32>,
    %c1_i32 = arith.constant 1 : i32
    %17 = tpu.dynamic_rotate %1 by %c1_i32 dim 1 : vector<8x512xf32>, i32 -> vector<8x512xf32>
    %18 = vector.extract_strided_slice %0 {offsets = [3, 0], sizes = [1, 512], strides = [1, 1]} : vector<9x512xf32> to vector<1x512xf32>
    %19 = vector.broadcast %18 : vector<1x512xf32> to vector<8x512xf32>
    %20 = arith.mulf %17, %19 : vector<8x512xf32>
    %c24 = arith.constant 24 : index
    %c0_7 = arith.constant 0 : index
    %21 = vector.load %arg14[%c24, %c0_7] : memref<144x512xf32, #tpu.memory_space<vmem>>, vector<8x512xf32>
    tpu.vector_store %arg14[%c24, %c0_7], %20 {strides = array<i32>} : memref<144x512xf32, #tpu.memory_space<vmem>>, vector<8x512xf32>,
    %22 = vector.extract_strided_slice %0 {offsets = [4, 0], sizes = [1, 512], strides = [1, 1]} : vector<9x512xf32> to vector<1x512xf32>
    %23 = vector.broadcast %22 : vector<1x512xf32> to vector<8x512xf32>
    %24 = arith.mulf %1, %23 : vector<8x512xf32>
    %c32 = arith.constant 32 : index
    %c0_8 = arith.constant 0 : index
    %25 = vector.load %arg14[%c32, %c0_8] : memref<144x512xf32, #tpu.memory_space<vmem>>, vector<8x512xf32>
    tpu.vector_store %arg14[%c32, %c0_8], %24 {strides = array<i32>} : memref<144x512xf32, #tpu.memory_space<vmem>>, vector<8x512xf32>,
    %c511_i32 = arith.constant 511 : i32
    %26 = tpu.dynamic_rotate %1 by %c511_i32 dim 1 : vector<8x512xf32>, i32 -> vector<8x512xf32>
    %27 = vector.extract_strided_slice %0 {offsets = [5, 0], sizes = [1, 512], strides = [1, 1]} : vector<9x512xf32> to vector<1x512xf32>
    %28 = vector.broadcast %27 : vector<1x512xf32> to vector<8x512xf32>
    %29 = arith.mulf %26, %28 : vector<8x512xf32>
    %c40 = arith.constant 40 : index
    %c0_9 = arith.constant 0 : index
    %30 = vector.load %arg14[%c40, %c0_9] : memref<144x512xf32, #tpu.memory_space<vmem>>, vector<8x512xf32>
    tpu.vector_store %arg14[%c40, %c0_9], %29 {strides = array<i32>} : memref<144x512xf32, #tpu.memory_space<vmem>>, vector<8x512xf32>,
    %c497_i32 = arith.constant 497 : i32
    %31 = tpu.dynamic_rotate %1 by %c497_i32 dim 1 : vector<8x512xf32>, i32 -> vector<8x512xf32>
    %32 = vector.extract_strided_slice %0 {offsets = [6, 0], sizes = [1, 512], strides = [1, 1]} : vector<9x512xf32> to vector<1x512xf32>
    %33 = vector.broadcast %32 : vector<1x512xf32> to vector<8x512xf32>
    %34 = arith.mulf %31, %33 : vector<8x512xf32>
    %c48 = arith.constant 48 : index
    %c0_10 = arith.constant 0 : index
    %35 = vector.load %arg14[%c48, %c0_10] : memref<144x512xf32, #tpu.memory_space<vmem>>, vector<8x512xf32>
    tpu.vector_store %arg14[%c48, %c0_10], %34 {strides = array<i32>} : memref<144x512xf32, #tpu.memory_space<vmem>>, vector<8x512xf32>,
    %c496_i32 = arith.constant 496 : i32
    %36 = tpu.dynamic_rotate %1 by %c496_i32 dim 1 : vector<8x512xf32>, i32 -> vector<8x512xf32>
    %37 = vector.extract_strided_slice %0 {offsets = [7, 0], sizes = [1, 512], strides = [1, 1]} : vector<9x512xf32> to vector<1x512xf32>
    %38 = vector.broadcast %37 : vector<1x512xf32> to vector<8x512xf32>
    %39 = arith.mulf %36, %38 : vector<8x512xf32>
    %c56 = arith.constant 56 : index
    %c0_11 = arith.constant 0 : index
    %40 = vector.load %arg14[%c56, %c0_11] : memref<144x512xf32, #tpu.memory_space<vmem>>, vector<8x512xf32>
    tpu.vector_store %arg14[%c56, %c0_11], %39 {strides = array<i32>} : memref<144x512xf32, #tpu.memory_space<vmem>>, vector<8x512xf32>,
    %c495_i32 = arith.constant 495 : i32
    %41 = tpu.dynamic_rotate %1 by %c495_i32 dim 1 : vector<8x512xf32>, i32 -> vector<8x512xf32>
    %42 = vector.extract_strided_slice %0 {offsets = [8, 0], sizes = [1, 512], strides = [1, 1]} : vector<9x512xf32> to vector<1x512xf32>
    %43 = vector.broadcast %42 : vector<1x512xf32> to vector<8x512xf32>
    %44 = arith.mulf %41, %43 : vector<8x512xf32>
    %c64 = arith.constant 64 : index
    %c0_12 = arith.constant 0 : index
    %45 = vector.load %arg14[%c64, %c0_12] : memref<144x512xf32, #tpu.memory_space<vmem>>, vector<8x512xf32>
    tpu.vector_store %arg14[%c64, %c0_12], %44 {strides = array<i32>} : memref<144x512xf32, #tpu.memory_space<vmem>>, vector<8x512xf32>,
    %c0_13 = arith.constant 0 : index
    %c0_14 = arith.constant 0 : index
    %46 = vector.load %arg14[%c0_13, %c0_14] : memref<144x512xf32, #tpu.memory_space<vmem>>, vector<72x512xf32>
    %47 = arith.truncf %46 : vector<72x512xf32> to vector<72x512xbf16>
    %c0_15 = arith.constant 0 : index
    %c0_16 = arith.constant 0 : index
    %48 = vector.load %arg3[%c0_15, %c0_16] : memref<8x72xbf16, #tpu.memory_space<vmem>>, vector<8x72xbf16>
    %cst = arith.constant dense<0.000000e+00> : vector<8x512xf32>
    %49 = tpu.matmul %48, %47, %cst {dimension_numbers = #tpu.dot_dimension_numbers<[1], [0], [0], [1], [0, 0, 1, 1], [], []>} : vector<8x72xbf16>, vector<72x512xbf16>, vector<8x512xf32> -> vector<8x512xf32>
    %c0_17 = arith.constant 0 : index
    %c0_18 = arith.constant 0 : index
    %50 = vector.load %arg4[%c0_17, %c0_18] : memref<8x1xf32, #tpu.memory_space<vmem>>, vector<8x1xf32>
    %51 = vector.broadcast %50 : vector<8x1xf32> to vector<8x512xf32>
    %52 = arith.addf %49, %51 : vector<8x512xf32>
    %cst_19 = arith.constant 0.000000e+00 : f32
    %53 = vector.broadcast %cst_19 : f32 to vector<8x512xf32>
    %54 = arith.maximumf %52, %53 : vector<8x512xf32>
    %c17_i32_20 = arith.constant 17 : i32
    %55 = tpu.dynamic_rotate %54 by %c17_i32_20 dim 1 : vector<8x512xf32>, i32 -> vector<8x512xf32>
    %56 = vector.extract_strided_slice %0 {offsets = [0, 0], sizes = [1, 512], strides = [1, 1]} : vector<9x512xf32> to vector<1x512xf32>
    %57 = vector.broadcast %56 : vector<1x512xf32> to vector<8x512xf32>
    %58 = arith.mulf %55, %57 : vector<8x512xf32>
    %c0_21 = arith.constant 0 : index
    %c0_22 = arith.constant 0 : index
    %59 = vector.load %arg14[%c0_21, %c0_22] : memref<144x512xf32, #tpu.memory_space<vmem>>, vector<8x512xf32>
    tpu.vector_store %arg14[%c0_21, %c0_22], %58 {strides = array<i32>} : memref<144x512xf32, #tpu.memory_space<vmem>>, vector<8x512xf32>,
    %c16_i32_23 = arith.constant 16 : i32
    %60 = tpu.dynamic_rotate %54 by %c16_i32_23 dim 1 : vector<8x512xf32>, i32 -> vector<8x512xf32>
    %61 = vector.extract_strided_slice %0 {offsets = [1, 0], sizes = [1, 512], strides = [1, 1]} : vector<9x512xf32> to vector<1x512xf32>
    %62 = vector.broadcast %61 : vector<1x512xf32> to vector<8x512xf32>
    %63 = arith.mulf %60, %62 : vector<8x512xf32>
    %c8_24 = arith.constant 8 : index
    %c0_25 = arith.constant 0 : index
    %64 = vector.load %arg14[%c8_24, %c0_25] : memref<144x512xf32, #tpu.memory_space<vmem>>, vector<8x512xf32>
    tpu.vector_store %arg14[%c8_24, %c0_25], %63 {strides = array<i32>} : memref<144x512xf32, #tpu.memory_space<vmem>>, vector<8x512xf32>,
    %c15_i32_26 = arith.constant 15 : i32
    %65 = tpu.dynamic_rotate %54 by %c15_i32_26 dim 1 : vector<8x512xf32>, i32 -> vector<8x512xf32>
    %66 = vector.extract_strided_slice %0 {offsets = [2, 0], sizes = [1, 512], strides = [1, 1]} : vector<9x512xf32> to vector<1x512xf32>
    %67 = vector.broadcast %66 : vector<1x512xf32> to vector<8x512xf32>
    %68 = arith.mulf %65, %67 : vector<8x512xf32>
    %c16_27 = arith.constant 16 : index
    %c0_28 = arith.constant 0 : index
    %69 = vector.load %arg14[%c16_27, %c0_28] : memref<144x512xf32, #tpu.memory_space<vmem>>, vector<8x512xf32>
    tpu.vector_store %arg14[%c16_27, %c0_28], %68 {strides = array<i32>} : memref<144x512xf32, #tpu.memory_space<vmem>>, vector<8x512xf32>,
    %c1_i32_29 = arith.constant 1 : i32
    %70 = tpu.dynamic_rotate %54 by %c1_i32_29 dim 1 : vector<8x512xf32>, i32 -> vector<8x512xf32>
    %71 = vector.extract_strided_slice %0 {offsets = [3, 0], sizes = [1, 512], strides = [1, 1]} : vector<9x512xf32> to vector<1x512xf32>
    %72 = vector.broadcast %71 : vector<1x512xf32> to vector<8x512xf32>
    %73 = arith.mulf %70, %72 : vector<8x512xf32>
    %c24_30 = arith.constant 24 : index
    %c0_31 = arith.constant 0 : index
    %74 = vector.load %arg14[%c24_30, %c0_31] : memref<144x512xf32, #tpu.memory_space<vmem>>, vector<8x512xf32>
    tpu.vector_store %arg14[%c24_30, %c0_31], %73 {strides = array<i32>} : memref<144x512xf32, #tpu.memory_space<vmem>>, vector<8x512xf32>,
    %75 = vector.extract_strided_slice %0 {offsets = [4, 0], sizes = [1, 512], strides = [1, 1]} : vector<9x512xf32> to vector<1x512xf32>
    %76 = vector.broadcast %75 : vector<1x512xf32> to vector<8x512xf32>
    %77 = arith.mulf %54, %76 : vector<8x512xf32>
    %c32_32 = arith.constant 32 : index
    %c0_33 = arith.constant 0 : index
    %78 = vector.load %arg14[%c32_32, %c0_33] : memref<144x512xf32, #tpu.memory_space<vmem>>, vector<8x512xf32>
    tpu.vector_store %arg14[%c32_32, %c0_33], %77 {strides = array<i32>} : memref<144x512xf32, #tpu.memory_space<vmem>>, vector<8x512xf32>,
    %c511_i32_34 = arith.constant 511 : i32
    %79 = tpu.dynamic_rotate %54 by %c511_i32_34 dim 1 : vector<8x512xf32>, i32 -> vector<8x512xf32>
    %80 = vector.extract_strided_slice %0 {offsets = [5, 0], sizes = [1, 512], strides = [1, 1]} : vector<9x512xf32> to vector<1x512xf32>
    %81 = vector.broadcast %80 : vector<1x512xf32> to vector<8x512xf32>
    %82 = arith.mulf %79, %81 : vector<8x512xf32>
    %c40_35 = arith.constant 40 : index
    %c0_36 = arith.constant 0 : index
    %83 = vector.load %arg14[%c40_35, %c0_36] : memref<144x512xf32, #tpu.memory_space<vmem>>, vector<8x512xf32>
    tpu.vector_store %arg14[%c40_35, %c0_36], %82 {strides = array<i32>} : memref<144x512xf32, #tpu.memory_space<vmem>>, vector<8x512xf32>,
    %c497_i32_37 = arith.constant 497 : i32
    %84 = tpu.dynamic_rotate %54 by %c497_i32_37 dim 1 : vector<8x512xf32>, i32 -> vector<8x512xf32>
    %85 = vector.extract_strided_slice %0 {offsets = [6, 0], sizes = [1, 512], strides = [1, 1]} : vector<9x512xf32> to vector<1x512xf32>
    %86 = vector.broadcast %85 : vector<1x512xf32> to vector<8x512xf32>
    %87 = arith.mulf %84, %86 : vector<8x512xf32>
    %c48_38 = arith.constant 48 : index
    %c0_39 = arith.constant 0 : index
    %88 = vector.load %arg14[%c48_38, %c0_39] : memref<144x512xf32, #tpu.memory_space<vmem>>, vector<8x512xf32>
    tpu.vector_store %arg14[%c48_38, %c0_39], %87 {strides = array<i32>} : memref<144x512xf32, #tpu.memory_space<vmem>>, vector<8x512xf32>,
    %c496_i32_40 = arith.constant 496 : i32
    %89 = tpu.dynamic_rotate %54 by %c496_i32_40 dim 1 : vector<8x512xf32>, i32 -> vector<8x512xf32>
    %90 = vector.extract_strided_slice %0 {offsets = [7, 0], sizes = [1, 512], strides = [1, 1]} : vector<9x512xf32> to vector<1x512xf32>
    %91 = vector.broadcast %90 : vector<1x512xf32> to vector<8x512xf32>
    %92 = arith.mulf %89, %91 : vector<8x512xf32>
    %c56_41 = arith.constant 56 : index
    %c0_42 = arith.constant 0 : index
    %93 = vector.load %arg14[%c56_41, %c0_42] : memref<144x512xf32, #tpu.memory_space<vmem>>, vector<8x512xf32>
    tpu.vector_store %arg14[%c56_41, %c0_42], %92 {strides = array<i32>} : memref<144x512xf32, #tpu.memory_space<vmem>>, vector<8x512xf32>,
    %c495_i32_43 = arith.constant 495 : i32
    %94 = tpu.dynamic_rotate %54 by %c495_i32_43 dim 1 : vector<8x512xf32>, i32 -> vector<8x512xf32>
    %95 = vector.extract_strided_slice %0 {offsets = [8, 0], sizes = [1, 512], strides = [1, 1]} : vector<9x512xf32> to vector<1x512xf32>
    %96 = vector.broadcast %95 : vector<1x512xf32> to vector<8x512xf32>
    %97 = arith.mulf %94, %96 : vector<8x512xf32>
    %c64_44 = arith.constant 64 : index
    %c0_45 = arith.constant 0 : index
    %98 = vector.load %arg14[%c64_44, %c0_45] : memref<144x512xf32, #tpu.memory_space<vmem>>, vector<8x512xf32>
    tpu.vector_store %arg14[%c64_44, %c0_45], %97 {strides = array<i32>} : memref<144x512xf32, #tpu.memory_space<vmem>>, vector<8x512xf32>,
    %c0_46 = arith.constant 0 : index
    %c0_47 = arith.constant 0 : index
    %99 = vector.load %arg14[%c0_46, %c0_47] : memref<144x512xf32, #tpu.memory_space<vmem>>, vector<72x512xf32>
    %100 = arith.truncf %99 : vector<72x512xf32> to vector<72x512xbf16>
    %c0_48 = arith.constant 0 : index
    %c0_49 = arith.constant 0 : index
    %101 = vector.load %arg5[%c0_48, %c0_49] : memref<16x72xbf16, #tpu.memory_space<vmem>>, vector<16x72xbf16>
    %cst_50 = arith.constant dense<0.000000e+00> : vector<16x512xf32>
    %102 = tpu.matmul %101, %100, %cst_50 {dimension_numbers = #tpu.dot_dimension_numbers<[1], [0], [0], [1], [0, 0, 1, 1], [], []>} : vector<16x72xbf16>, vector<72x512xbf16>, vector<16x512xf32> -> vector<16x512xf32>
    %c0_51 = arith.constant 0 : index
    %c0_52 = arith.constant 0 : index
    %103 = vector.load %arg6[%c0_51, %c0_52] : memref<16x1xf32, #tpu.memory_space<vmem>>, vector<16x1xf32>
    %104 = vector.broadcast %103 : vector<16x1xf32> to vector<16x512xf32>
    %105 = arith.addf %102, %104 : vector<16x512xf32>
    %cst_53 = arith.constant 0.000000e+00 : f32
    %106 = vector.broadcast %cst_53 : f32 to vector<16x512xf32>
    %107 = arith.maximumf %105, %106 : vector<16x512xf32>
    %c17_i32_54 = arith.constant 17 : i32
    %108 = tpu.dynamic_rotate %107 by %c17_i32_54 dim 1 : vector<16x512xf32>, i32 -> vector<16x512xf32>
    %109 = vector.extract_strided_slice %0 {offsets = [0, 0], sizes = [1, 512], strides = [1, 1]} : vector<9x512xf32> to vector<1x512xf32>
    %110 = vector.broadcast %109 : vector<1x512xf32> to vector<16x512xf32>
    %111 = arith.mulf %108, %110 : vector<16x512xf32>
    %c0_55 = arith.constant 0 : index
    %c0_56 = arith.constant 0 : index
    %112 = vector.load %arg14[%c0_55, %c0_56] : memref<144x512xf32, #tpu.memory_space<vmem>>, vector<16x512xf32>
    tpu.vector_store %arg14[%c0_55, %c0_56], %111 {strides = array<i32>} : memref<144x512xf32, #tpu.memory_space<vmem>>, vector<16x512xf32>,
    %c16_i32_57 = arith.constant 16 : i32
    %113 = tpu.dynamic_rotate %107 by %c16_i32_57 dim 1 : vector<16x512xf32>, i32 -> vector<16x512xf32>
    %114 = vector.extract_strided_slice %0 {offsets = [1, 0], sizes = [1, 512], strides = [1, 1]} : vector<9x512xf32> to vector<1x512xf32>
    %115 = vector.broadcast %114 : vector<1x512xf32> to vector<16x512xf32>
    %116 = arith.mulf %113, %115 : vector<16x512xf32>
    %c16_58 = arith.constant 16 : index
    %c0_59 = arith.constant 0 : index
    %117 = vector.load %arg14[%c16_58, %c0_59] : memref<144x512xf32, #tpu.memory_space<vmem>>, vector<16x512xf32>
    tpu.vector_store %arg14[%c16_58, %c0_59], %116 {strides = array<i32>} : memref<144x512xf32, #tpu.memory_space<vmem>>, vector<16x512xf32>,
    %c15_i32_60 = arith.constant 15 : i32
    %118 = tpu.dynamic_rotate %107 by %c15_i32_60 dim 1 : vector<16x512xf32>, i32 -> vector<16x512xf32>
    %119 = vector.extract_strided_slice %0 {offsets = [2, 0], sizes = [1, 512], strides = [1, 1]} : vector<9x512xf32> to vector<1x512xf32>
    %120 = vector.broadcast %119 : vector<1x512xf32> to vector<16x512xf32>
    %121 = arith.mulf %118, %120 : vector<16x512xf32>
    %c32_61 = arith.constant 32 : index
    %c0_62 = arith.constant 0 : index
    %122 = vector.load %arg14[%c32_61, %c0_62] : memref<144x512xf32, #tpu.memory_space<vmem>>, vector<16x512xf32>
    tpu.vector_store %arg14[%c32_61, %c0_62], %121 {strides = array<i32>} : memref<144x512xf32, #tpu.memory_space<vmem>>, vector<16x512xf32>,
    %c1_i32_63 = arith.constant 1 : i32
    %123 = tpu.dynamic_rotate %107 by %c1_i32_63 dim 1 : vector<16x512xf32>, i32 -> vector<16x512xf32>
    %124 = vector.extract_strided_slice %0 {offsets = [3, 0], sizes = [1, 512], strides = [1, 1]} : vector<9x512xf32> to vector<1x512xf32>
    %125 = vector.broadcast %124 : vector<1x512xf32> to vector<16x512xf32>
    %126 = arith.mulf %123, %125 : vector<16x512xf32>
    %c48_64 = arith.constant 48 : index
    %c0_65 = arith.constant 0 : index
    %127 = vector.load %arg14[%c48_64, %c0_65] : memref<144x512xf32, #tpu.memory_space<vmem>>, vector<16x512xf32>
    tpu.vector_store %arg14[%c48_64, %c0_65], %126 {strides = array<i32>} : memref<144x512xf32, #tpu.memory_space<vmem>>, vector<16x512xf32>,
    %128 = vector.extract_strided_slice %0 {offsets = [4, 0], sizes = [1, 512], strides = [1, 1]} : vector<9x512xf32> to vector<1x512xf32>
    %129 = vector.broadcast %128 : vector<1x512xf32> to vector<16x512xf32>
    %130 = arith.mulf %107, %129 : vector<16x512xf32>
    %c64_66 = arith.constant 64 : index
    %c0_67 = arith.constant 0 : index
    %131 = vector.load %arg14[%c64_66, %c0_67] : memref<144x512xf32, #tpu.memory_space<vmem>>, vector<16x512xf32>
    tpu.vector_store %arg14[%c64_66, %c0_67], %130 {strides = array<i32>} : memref<144x512xf32, #tpu.memory_space<vmem>>, vector<16x512xf32>,
    %c511_i32_68 = arith.constant 511 : i32
    %132 = tpu.dynamic_rotate %107 by %c511_i32_68 dim 1 : vector<16x512xf32>, i32 -> vector<16x512xf32>
    %133 = vector.extract_strided_slice %0 {offsets = [5, 0], sizes = [1, 512], strides = [1, 1]} : vector<9x512xf32> to vector<1x512xf32>
    %134 = vector.broadcast %133 : vector<1x512xf32> to vector<16x512xf32>
    %135 = arith.mulf %132, %134 : vector<16x512xf32>
    %c80 = arith.constant 80 : index
    %c0_69 = arith.constant 0 : index
    %136 = vector.load %arg14[%c80, %c0_69] : memref<144x512xf32, #tpu.memory_space<vmem>>, vector<16x512xf32>
    tpu.vector_store %arg14[%c80, %c0_69], %135 {strides = array<i32>} : memref<144x512xf32, #tpu.memory_space<vmem>>, vector<16x512xf32>,
    %c497_i32_70 = arith.constant 497 : i32
    %137 = tpu.dynamic_rotate %107 by %c497_i32_70 dim 1 : vector<16x512xf32>, i32 -> vector<16x512xf32>
    %138 = vector.extract_strided_slice %0 {offsets = [6, 0], sizes = [1, 512], strides = [1, 1]} : vector<9x512xf32> to vector<1x512xf32>
    %139 = vector.broadcast %138 : vector<1x512xf32> to vector<16x512xf32>
    %140 = arith.mulf %137, %139 : vector<16x512xf32>
    %c96 = arith.constant 96 : index
    %c0_71 = arith.constant 0 : index
    %141 = vector.load %arg14[%c96, %c0_71] : memref<144x512xf32, #tpu.memory_space<vmem>>, vector<16x512xf32>
    tpu.vector_store %arg14[%c96, %c0_71], %140 {strides = array<i32>} : memref<144x512xf32, #tpu.memory_space<vmem>>, vector<16x512xf32>,
    %c496_i32_72 = arith.constant 496 : i32
    %142 = tpu.dynamic_rotate %107 by %c496_i32_72 dim 1 : vector<16x512xf32>, i32 -> vector<16x512xf32>
    %143 = vector.extract_strided_slice %0 {offsets = [7, 0], sizes = [1, 512], strides = [1, 1]} : vector<9x512xf32> to vector<1x512xf32>
    %144 = vector.broadcast %143 : vector<1x512xf32> to vector<16x512xf32>
    %145 = arith.mulf %142, %144 : vector<16x512xf32>
    %c112 = arith.constant 112 : index
    %c0_73 = arith.constant 0 : index
    %146 = vector.load %arg14[%c112, %c0_73] : memref<144x512xf32, #tpu.memory_space<vmem>>, vector<16x512xf32>
    tpu.vector_store %arg14[%c112, %c0_73], %145 {strides = array<i32>} : memref<144x512xf32, #tpu.memory_space<vmem>>, vector<16x512xf32>,
    %c495_i32_74 = arith.constant 495 : i32
    %147 = tpu.dynamic_rotate %107 by %c495_i32_74 dim 1 : vector<16x512xf32>, i32 -> vector<16x512xf32>
    %148 = vector.extract_strided_slice %0 {offsets = [8, 0], sizes = [1, 512], strides = [1, 1]} : vector<9x512xf32> to vector<1x512xf32>
    %149 = vector.broadcast %148 : vector<1x512xf32> to vector<16x512xf32>
    %150 = arith.mulf %147, %149 : vector<16x512xf32>
    %c128 = arith.constant 128 : index
    %c0_75 = arith.constant 0 : index
    %151 = vector.load %arg14[%c128, %c0_75] : memref<144x512xf32, #tpu.memory_space<vmem>>, vector<16x512xf32>
    tpu.vector_store %arg14[%c128, %c0_75], %150 {strides = array<i32>} : memref<144x512xf32, #tpu.memory_space<vmem>>, vector<16x512xf32>,
    %c0_76 = arith.constant 0 : index
    %c0_77 = arith.constant 0 : index
    %152 = vector.load %arg14[%c0_76, %c0_77] : memref<144x512xf32, #tpu.memory_space<vmem>>, vector<144x512xf32>
    %153 = arith.truncf %152 : vector<144x512xf32> to vector<144x512xbf16>
    %c0_78 = arith.constant 0 : index
    %c0_79 = arith.constant 0 : index
    %154 = vector.load %arg7[%c0_78, %c0_79] : memref<8x144xbf16, #tpu.memory_space<vmem>>, vector<8x144xbf16>
    %cst_80 = arith.constant dense<0.000000e+00> : vector<8x512xf32>
    %155 = tpu.matmul %154, %153, %cst_80 {dimension_numbers = #tpu.dot_dimension_numbers<[1], [0], [0], [1], [0, 0, 1, 1], [], []>} : vector<8x144xbf16>, vector<144x512xbf16>, vector<8x512xf32> -> vector<8x512xf32>
    %c0_81 = arith.constant 0 : index
    %c0_82 = arith.constant 0 : index
    %156 = vector.load %arg8[%c0_81, %c0_82] : memref<8x1xf32, #tpu.memory_space<vmem>>, vector<8x1xf32>
    %157 = vector.broadcast %156 : vector<8x1xf32> to vector<8x512xf32>
    %158 = arith.addf %155, %157 : vector<8x512xf32>
    %cst_83 = arith.constant 0.000000e+00 : f32
    %159 = vector.broadcast %cst_83 : f32 to vector<8x512xf32>
    %160 = arith.maximumf %158, %159 : vector<8x512xf32>
    %c17_i32_84 = arith.constant 17 : i32
    %161 = tpu.dynamic_rotate %160 by %c17_i32_84 dim 1 : vector<8x512xf32>, i32 -> vector<8x512xf32>
    %162 = vector.extract_strided_slice %0 {offsets = [0, 0], sizes = [1, 512], strides = [1, 1]} : vector<9x512xf32> to vector<1x512xf32>
    %163 = vector.broadcast %162 : vector<1x512xf32> to vector<8x512xf32>
    %164 = arith.mulf %161, %163 : vector<8x512xf32>
    %c0_85 = arith.constant 0 : index
    %c0_86 = arith.constant 0 : index
    %165 = vector.load %arg14[%c0_85, %c0_86] : memref<144x512xf32, #tpu.memory_space<vmem>>, vector<8x512xf32>
    tpu.vector_store %arg14[%c0_85, %c0_86], %164 {strides = array<i32>} : memref<144x512xf32, #tpu.memory_space<vmem>>, vector<8x512xf32>,
    %c16_i32_87 = arith.constant 16 : i32
    %166 = tpu.dynamic_rotate %160 by %c16_i32_87 dim 1 : vector<8x512xf32>, i32 -> vector<8x512xf32>
    %167 = vector.extract_strided_slice %0 {offsets = [1, 0], sizes = [1, 512], strides = [1, 1]} : vector<9x512xf32> to vector<1x512xf32>
    %168 = vector.broadcast %167 : vector<1x512xf32> to vector<8x512xf32>
    %169 = arith.mulf %166, %168 : vector<8x512xf32>
    %c8_88 = arith.constant 8 : index
    %c0_89 = arith.constant 0 : index
    %170 = vector.load %arg14[%c8_88, %c0_89] : memref<144x512xf32, #tpu.memory_space<vmem>>, vector<8x512xf32>
    tpu.vector_store %arg14[%c8_88, %c0_89], %169 {strides = array<i32>} : memref<144x512xf32, #tpu.memory_space<vmem>>, vector<8x512xf32>,
    %c15_i32_90 = arith.constant 15 : i32
    %171 = tpu.dynamic_rotate %160 by %c15_i32_90 dim 1 : vector<8x512xf32>, i32 -> vector<8x512xf32>
    %172 = vector.extract_strided_slice %0 {offsets = [2, 0], sizes = [1, 512], strides = [1, 1]} : vector<9x512xf32> to vector<1x512xf32>
    %173 = vector.broadcast %172 : vector<1x512xf32> to vector<8x512xf32>
    %174 = arith.mulf %171, %173 : vector<8x512xf32>
    %c16_91 = arith.constant 16 : index
    %c0_92 = arith.constant 0 : index
    %175 = vector.load %arg14[%c16_91, %c0_92] : memref<144x512xf32, #tpu.memory_space<vmem>>, vector<8x512xf32>
    tpu.vector_store %arg14[%c16_91, %c0_92], %174 {strides = array<i32>} : memref<144x512xf32, #tpu.memory_space<vmem>>, vector<8x512xf32>,
    %c1_i32_93 = arith.constant 1 : i32
    %176 = tpu.dynamic_rotate %160 by %c1_i32_93 dim 1 : vector<8x512xf32>, i32 -> vector<8x512xf32>
    %177 = vector.extract_strided_slice %0 {offsets = [3, 0], sizes = [1, 512], strides = [1, 1]} : vector<9x512xf32> to vector<1x512xf32>
    %178 = vector.broadcast %177 : vector<1x512xf32> to vector<8x512xf32>
    %179 = arith.mulf %176, %178 : vector<8x512xf32>
    %c24_94 = arith.constant 24 : index
    %c0_95 = arith.constant 0 : index
    %180 = vector.load %arg14[%c24_94, %c0_95] : memref<144x512xf32, #tpu.memory_space<vmem>>, vector<8x512xf32>
    tpu.vector_store %arg14[%c24_94, %c0_95], %179 {strides = array<i32>} : memref<144x512xf32, #tpu.memory_space<vmem>>, vector<8x512xf32>,
    %181 = vector.extract_strided_slice %0 {offsets = [4, 0], sizes = [1, 512], strides = [1, 1]} : vector<9x512xf32> to vector<1x512xf32>
    %182 = vector.broadcast %181 : vector<1x512xf32> to vector<8x512xf32>
    %183 = arith.mulf %160, %182 : vector<8x512xf32>
    %c32_96 = arith.constant 32 : index
    %c0_97 = arith.constant 0 : index
    %184 = vector.load %arg14[%c32_96, %c0_97] : memref<144x512xf32, #tpu.memory_space<vmem>>, vector<8x512xf32>
    tpu.vector_store %arg14[%c32_96, %c0_97], %183 {strides = array<i32>} : memref<144x512xf32, #tpu.memory_space<vmem>>, vector<8x512xf32>,
    %c511_i32_98 = arith.constant 511 : i32
    %185 = tpu.dynamic_rotate %160 by %c511_i32_98 dim 1 : vector<8x512xf32>, i32 -> vector<8x512xf32>
    %186 = vector.extract_strided_slice %0 {offsets = [5, 0], sizes = [1, 512], strides = [1, 1]} : vector<9x512xf32> to vector<1x512xf32>
    %187 = vector.broadcast %186 : vector<1x512xf32> to vector<8x512xf32>
    %188 = arith.mulf %185, %187 : vector<8x512xf32>
    %c40_99 = arith.constant 40 : index
    %c0_100 = arith.constant 0 : index
    %189 = vector.load %arg14[%c40_99, %c0_100] : memref<144x512xf32, #tpu.memory_space<vmem>>, vector<8x512xf32>
    tpu.vector_store %arg14[%c40_99, %c0_100], %188 {strides = array<i32>} : memref<144x512xf32, #tpu.memory_space<vmem>>, vector<8x512xf32>,
    %c497_i32_101 = arith.constant 497 : i32
    %190 = tpu.dynamic_rotate %160 by %c497_i32_101 dim 1 : vector<8x512xf32>, i32 -> vector<8x512xf32>
    %191 = vector.extract_strided_slice %0 {offsets = [6, 0], sizes = [1, 512], strides = [1, 1]} : vector<9x512xf32> to vector<1x512xf32>
    %192 = vector.broadcast %191 : vector<1x512xf32> to vector<8x512xf32>
    %193 = arith.mulf %190, %192 : vector<8x512xf32>
    %c48_102 = arith.constant 48 : index
    %c0_103 = arith.constant 0 : index
    %194 = vector.load %arg14[%c48_102, %c0_103] : memref<144x512xf32, #tpu.memory_space<vmem>>, vector<8x512xf32>
    tpu.vector_store %arg14[%c48_102, %c0_103], %193 {strides = array<i32>} : memref<144x512xf32, #tpu.memory_space<vmem>>, vector<8x512xf32>,
    %c496_i32_104 = arith.constant 496 : i32
    %195 = tpu.dynamic_rotate %160 by %c496_i32_104 dim 1 : vector<8x512xf32>, i32 -> vector<8x512xf32>
    %196 = vector.extract_strided_slice %0 {offsets = [7, 0], sizes = [1, 512], strides = [1, 1]} : vector<9x512xf32> to vector<1x512xf32>
    %197 = vector.broadcast %196 : vector<1x512xf32> to vector<8x512xf32>
    %198 = arith.mulf %195, %197 : vector<8x512xf32>
    %c56_105 = arith.constant 56 : index
    %c0_106 = arith.constant 0 : index
    %199 = vector.load %arg14[%c56_105, %c0_106] : memref<144x512xf32, #tpu.memory_space<vmem>>, vector<8x512xf32>
    tpu.vector_store %arg14[%c56_105, %c0_106], %198 {strides = array<i32>} : memref<144x512xf32, #tpu.memory_space<vmem>>, vector<8x512xf32>,
    %c495_i32_107 = arith.constant 495 : i32
    %200 = tpu.dynamic_rotate %160 by %c495_i32_107 dim 1 : vector<8x512xf32>, i32 -> vector<8x512xf32>
    %201 = vector.extract_strided_slice %0 {offsets = [8, 0], sizes = [1, 512], strides = [1, 1]} : vector<9x512xf32> to vector<1x512xf32>
    %202 = vector.broadcast %201 : vector<1x512xf32> to vector<8x512xf32>
    %203 = arith.mulf %200, %202 : vector<8x512xf32>
    %c64_108 = arith.constant 64 : index
    %c0_109 = arith.constant 0 : index
    %204 = vector.load %arg14[%c64_108, %c0_109] : memref<144x512xf32, #tpu.memory_space<vmem>>, vector<8x512xf32>
    tpu.vector_store %arg14[%c64_108, %c0_109], %203 {strides = array<i32>} : memref<144x512xf32, #tpu.memory_space<vmem>>, vector<8x512xf32>,
    %c0_110 = arith.constant 0 : index
    %c0_111 = arith.constant 0 : index
    %205 = vector.load %arg14[%c0_110, %c0_111] : memref<144x512xf32, #tpu.memory_space<vmem>>, vector<72x512xf32>
    %206 = arith.truncf %205 : vector<72x512xf32> to vector<72x512xbf16>
    %c0_112 = arith.constant 0 : index
    %c0_113 = arith.constant 0 : index
    %207 = vector.load %arg9[%c0_112, %c0_113] : memref<4x72xbf16, #tpu.memory_space<vmem>>, vector<4x72xbf16>
    %cst_114 = arith.constant dense<0.000000e+00> : vector<4x512xf32>
    %208 = tpu.matmul %207, %206, %cst_114 {dimension_numbers = #tpu.dot_dimension_numbers<[1], [0], [0], [1], [0, 0, 1, 1], [], []>} : vector<4x72xbf16>, vector<72x512xbf16>, vector<4x512xf32> -> vector<4x512xf32>
    %c0_115 = arith.constant 0 : index
    %c0_116 = arith.constant 0 : index
    %209 = vector.load %arg10[%c0_115, %c0_116] : memref<4x1xf32, #tpu.memory_space<vmem>>, vector<4x1xf32>
    %210 = vector.broadcast %209 : vector<4x1xf32> to vector<4x512xf32>
    %211 = arith.addf %208, %210 : vector<4x512xf32>
    %cst_117 = arith.constant 0.000000e+00 : f32
    %212 = vector.broadcast %cst_117 : f32 to vector<4x512xf32>
    %213 = arith.maximumf %211, %212 : vector<4x512xf32>
    %214 = vector.shape_cast %213 : vector<4x512xf32> to vector<4x2x256xf32>
    %215 = arith.truncf %214 : vector<4x2x256xf32> to vector<4x2x256xbf16>
    %c0_118 = arith.constant 0 : index
    %c0_119 = arith.constant 0 : index
    %c0_120 = arith.constant 0 : index
    %216 = vector.load %arg11[%c0_118, %c0_119, %c0_120] : memref<4x256x128xbf16, #tpu.memory_space<vmem>>, vector<4x256x128xbf16>
    %cst_121 = arith.constant dense<0.000000e+00> : vector<4x2x128xf32>
    %217 = tpu.matmul %215, %216, %cst_121 {dimension_numbers = #tpu.dot_dimension_numbers<[2], [1], [1], [2], [0, 0, 0, 1, 1, 2], [0], [0]>} : vector<4x2x256xbf16>, vector<4x256x128xbf16>, vector<4x2x128xf32> -> vector<4x2x128xf32>
    %cst_122 = arith.constant dense<0.000000e+00> : vector<2x128xf32>
    %218 = vector.multi_reduction <add>, %217, %cst_122 [0] : vector<4x2x128xf32> to vector<2x128xf32>
    %c0_123 = arith.constant 0 : index
    %c0_124 = arith.constant 0 : index
    %219 = vector.load %arg12[%c0_123, %c0_124] : memref<1x128xf32, #tpu.memory_space<vmem>>, vector<1x128xf32>
    %220 = vector.broadcast %219 : vector<1x128xf32> to vector<2x128xf32>
    %221 = arith.addf %218, %220 : vector<2x128xf32>
    %c0_125 = arith.constant 0 : index
    %c0_126 = arith.constant 0 : index
    %222 = vector.load %arg13[%c0_125, %c0_126] : memref<2x128xf32, #tpu.memory_space<vmem>>, vector<2x128xf32>
    tpu.vector_store %arg13[%c0_125, %c0_126], %221 {strides = array<i32>} : memref<2x128xf32, #tpu.memory_space<vmem>>, vector<2x128xf32>,
    return
  }
  func.func @transform_0(%arg0: i32) -> (i32, i32) {
    %c0_i32 = arith.constant 0 : i32
    %c0_i32_0 = arith.constant 0 : i32
    %c0_i32_1 = arith.constant 0 : i32
    return %c0_i32, %c0_i32_0 : i32, i32
  }
  func.func @transform_1(%arg0: i32) -> (i32, i32) {
    %c0_i32 = arith.constant 0 : i32
    %c0_i32_0 = arith.constant 0 : i32
    %c0_i32_1 = arith.constant 0 : i32
    return %c0_i32, %c0_i32_0 : i32, i32
  }
  func.func @transform_2(%arg0: i32) -> (i32, i32) {
    %c0_i32 = arith.constant 0 : i32
    %c0_i32_0 = arith.constant 0 : i32
    %c0_i32_1 = arith.constant 0 : i32
    return %c0_i32, %c0_i32_0 : i32, i32
  }
  func.func @transform_3(%arg0: i32) -> (i32, i32) {
    %c0_i32 = arith.constant 0 : i32
    %c0_i32_0 = arith.constant 0 : i32
    %c0_i32_1 = arith.constant 0 : i32
    return %c0_i32, %c0_i32_0 : i32, i32
  }
  func.func @transform_4(%arg0: i32) -> (i32, i32) {
    %c0_i32 = arith.constant 0 : i32
    %c0_i32_0 = arith.constant 0 : i32
    %c0_i32_1 = arith.constant 0 : i32
    return %c0_i32, %c0_i32_0 : i32, i32
  }
  func.func @transform_5(%arg0: i32) -> (i32, i32) {
    %c0_i32 = arith.constant 0 : i32
    %c0_i32_0 = arith.constant 0 : i32
    %c0_i32_1 = arith.constant 0 : i32
    return %c0_i32, %c0_i32_0 : i32, i32
  }
  func.func @transform_6(%arg0: i32) -> (i32, i32) {
    %c0_i32 = arith.constant 0 : i32
    %c0_i32_0 = arith.constant 0 : i32
    %c0_i32_1 = arith.constant 0 : i32
    return %c0_i32, %c0_i32_0 : i32, i32
  }
  func.func @transform_7(%arg0: i32) -> (i32, i32) {
    %c0_i32 = arith.constant 0 : i32
    %c0_i32_0 = arith.constant 0 : i32
    %c0_i32_1 = arith.constant 0 : i32
    return %c0_i32, %c0_i32_0 : i32, i32
  }
  func.func @transform_8(%arg0: i32) -> (i32, i32) {
    %c0_i32 = arith.constant 0 : i32
    %c0_i32_0 = arith.constant 0 : i32
    %c0_i32_1 = arith.constant 0 : i32
    return %c0_i32, %c0_i32_0 : i32, i32
  }
  func.func @transform_9(%arg0: i32) -> (i32, i32) {
    %c0_i32 = arith.constant 0 : i32
    %c0_i32_0 = arith.constant 0 : i32
    %c0_i32_1 = arith.constant 0 : i32
    return %c0_i32, %c0_i32_0 : i32, i32
  }
  func.func @transform_10(%arg0: i32) -> (i32, i32, i32) {
    %c0_i32 = arith.constant 0 : i32
    %c0_i32_0 = arith.constant 0 : i32
    %c0_i32_1 = arith.constant 0 : i32
    %c0_i32_2 = arith.constant 0 : i32
    return %c0_i32, %c0_i32_0, %c0_i32_1 : i32, i32, i32
  }
  func.func @transform_11(%arg0: i32) -> (i32, i32) {
    %c0_i32 = arith.constant 0 : i32
    %c0_i32_0 = arith.constant 0 : i32
    %c0_i32_1 = arith.constant 0 : i32
    return %c0_i32, %c0_i32_0 : i32, i32
  }
  func.func @transform_12(%arg0: i32) -> (i32, i32) {
    %c0_i32 = arith.constant 0 : i32
    %c0_i32_0 = arith.constant 0 : i32
    %c0_i32_1 = arith.constant 0 : i32
    return %c0_i32, %c0_i32_0 : i32, i32
  }
}

</mosaic_0001>

<bundles_post_ra>
// kernel: model_forward.1
= control target key start
LH: loop header
LB: loop body
LE: loop exit
PB: predicated region body
PF: predicated region fallthrough
CT: control target
= control target key end

     0   :  { %17 = vsyncpa [#allocation4], 0  ;;  %s4194_s0 = inlined_call_operand.vmem [shape: f32[8,512], index: 0, kind: input, shape index: {}]   ;;  %s4195_s1 = inlined_call_operand.vmem [shape: f32[9,512], index: 1, kind: input, shape index: {}]   ;;  %s4196_s2 = inlined_call_operand.vmem [shape: bf16[8,72], index: 2, kind: input, shape index: {}]   ;;  %s4197_s3 = inlined_call_operand.vmem [shape: f32[8,1], index: 3, kind: input, shape index: {}]   ;;  %s4198_s4 = inlined_call_operand.vmem [shape: bf16[16,72], index: 4, kind: input, shape index: {}]   ;;  %s4199_s5 = inlined_call_operand.vmem [shape: f32[16,1], index: 5, kind: input, shape index: {}]   ;;  %s4200_s6 = inlined_call_operand.vmem [shape: bf16[8,144], index: 6, kind: input, shape index: {}]   ;;  %s4201_s7 = inlined_call_operand.vmem [shape: f32[8,1], index: 7, kind: input, shape index: {}]   ;;  %s4202_s8 = inlined_call_operand.vmem [shape: bf16[4,72], index: 8, kind: input, shape index: {}]   ;;  %s4203_s9 = inlined_call_operand.vmem [shape: f32[4,1], index: 9, kind: input, shape index: {}]   ;;  %s4204_s10 = inlined_call_operand.hbm [shape: bf16[4,256,128], index: 10, kind: input, shape index: {}]   ;;  %s4205_s11 = inlined_call_operand.vmem [shape: f32[1,128], index: 11, kind: input, shape index: {}]   ;;  %s4206_s12 = inlined_call_operand.hbm [shape: f32[2,128], index: 12, kind: output, shape index: {}]  }
   0x1   :  { %18 = vsyncpa [#allocation5], 0  ;;  %s2871_s21 = smov [#allocation3]  }
   0x2   :  { %s44_s22 = sshll.u32 %s2871_s21, 4  ;;  %s45_s22 = int_to_ptr.vmem [resolvable:$true] %s44_s22 }
   0x3   :  { %s2835_s23 = scalar_lea.vmem %s45_s22, 8192  ;;  %p2840_p1 = scmp.lt.s32.totalorder %s45_s22, %s45_s22 }
   0x4   :  { %p2836_p0 = scmp.ne.s32.totalorder %s45_s22, %s2835_s23  ;;  %p2841_p2 = scmp.lt.s32.totalorder %s2835_s23, %s2835_s23 }
   0x6   :  { %p2842_p3 = por %p2841_p2, %p2840_p1 }
   0x8   :  { %p2843_p4 = pnand %p2842_p3, %p2836_p0 }
   0xa   :  { %2846 = shalt.err (!%p2843_p4)
}
   0xb   :  { %s2872_s24 = smov 64   ;;  %s2873_s25 = smov 4  }
   0xc   :  { %50 = dma.hbm_to_vmem [thread:$0]  %s4204_s10, 8192, %s45_s22, [#allocation4], %s2872_s24, %s2872_s24, %s2873_s25  }
   0xd   :  { %2867 = dma.done.wait [#allocation4], 8192  }
   0xe   :  { %2868 = vsyncadd [#allocation4], 4294959104  ;;  %v2958_v0 = vld [vmem:[%s4194_s0 + $0x10] sm:$0xff]  ;;  %v2963_v1 = vld [vmem:[%s4194_s0] sm:$0xff]  ;;  %s2874_s14 = smov 111   ;;  %s2875_s18 = smov 113   ;;  %v77_v6 = vlaneseq }
   0xf   :  { %358 = vrot.lane.b32.xlu1 %v2958_v0, %s2874_s14  ;;  %354 = vrot.lane.b32.xlu0 %v2963_v1, %s2874_s14  ;;  %v2972_v2 = vld [vmem:[%s4194_s0 + $0x18] sm:$0xff]  ;;  %v2977_v3 = vld [vmem:[%s4194_s0 + $0x8] sm:$0xff]  ;;  %s2876_s0 = smov 112   ;;  %s2877_s19 = smov 127   ;;  %v4207_v4 = vmov 0   ;;  %vm458_vm1 = vcmask 1043456  }
  0x10   :  { %s2878_s20 = smov 15   ;;  %s2879_s21 = smov 1   ;;  %503 = vmatprep.mubr.bf16.mxu0 %v4207_v4  ;;  %544 = vmatprep.mubr.bf16.mxu1 %v4207_v4  ;;  %v448_v5 = vld [vmem:[%s4197_s3] sm:$0xff]  ;;  %v3046_v7 = vand.u32 127, %v77_v6  ;;  %v3052_v10 = vld [vmem:[%s4195_s1 + $0x28] ss:$0 sm:$0xff] }
  0x11   :  { %s2880_s22 = smov 17   ;;  %2754 = vset.pattern.permute.xlu0 %v4207_v4  ;;  %2755 = vset.pattern.permute.xlu1 %v4207_v4  ;;  %s2882_s23 = smov 16   ;;  %v3057_v11 = vld [vmem:[%s4195_s1 + $0x38] ss:$0 sm:$0xff]  ;;  %v3062_v12 = vld [vmem:[%s4195_s1 + $0x20] ss:$0 sm:$0xff] }
  0x12   :  { %vm362_vm0 = vcmp.lt.s32.totalorder %v3046_v7, 111  ;;  %v3067_v13 = vld [vmem:[%s4195_s1 + $0x30] ss:$0 sm:$0xff]  ;;  %v3081_v30 = vshrl.u32 %v77_v6, 7  ;;  %v3090_v35 = vld [vmem:[%s4195_s1 + $0x18] sm:$0xff]  ;;  %v3095_v36 = vld [vmem:[%s4195_s1 + $0x8] sm:$0xff] }
  0x13   :  { %360 = vrot.lane.b32.xlu1 %v2972_v2, %s2874_s14  ;;  %356 = vrot.lane.b32.xlu0 %v2977_v3, %s2874_s14  ;;  %v3102_v39 = vld [vmem:[%s4195_s1 + $0x10] sm:$0xff]  ;;  %vm325_vm2 = vcmp.lt.s32.totalorder %v3046_v7, 112  ;;  %vm288_vm3 = vcmp.lt.s32.totalorder %v3046_v7, 113  ;;  %v3109_v40 = vld [vmem:[%s4195_s1] sm:$0xff]  ;;  %vm251_vm4 = vcmp.lt.s32.totalorder %v3046_v7, 127  ;;  %vm153_vm5 = vcmp.lt.s32.totalorder %v3046_v7, 15 }
  0x14   :  { %4248 = vst [vmem:[#allocation9_spill] sm:$0xff] %v3081_v30  ;;  %v332_v37 = vsub.s32 7, %v3081_v30  ;;  %v295_v38 = vsub.s32 6, %v3081_v30  ;;  %v258_v55 = vsub.s32 5, %v3081_v30  ;;  %v221_v56 = vsub.s32 4, %v3081_v30 }
  0x15   :  { %vm190_vm6 = vcmp.lt.s32.totalorder %v3046_v7, 1  ;;  %vm79_vm7 = vcmp.lt.s32.totalorder %v3046_v7, 17  ;;  %vm116_vm8 = vcmp.lt.s32.totalorder %v3046_v7, 16  ;;  %vm454_vm9 = vcmask 588800   ;;  %v1680_v7 = vld [vmem:[%s4202_s8] sm:$0x3] }
  0x16   :  { %v3112_v41 = vrot.slane %v3090_v35, %v295_v38  ;;  %v3115_v42 = vrot.slane %v3095_v36, %v295_v38  ;;  %v3122_v47 = vrot.slane %v3102_v39, %v295_v38  ;;  %v3125_v48 = vrot.slane %v3109_v40, %v332_v37 }
  0x17   :  { %282 = vrot.lane.b32.xlu1 %v2977_v3, %s2875_s18  ;;  %280 = vrot.lane.b32.xlu0 %v2963_v1, %s2875_s18  ;;  %v3130_v50 = vrot.slane %v3090_v35, %v332_v37  ;;  %v3133_v51 = vrot.slane %v3095_v36, %v332_v37  ;;  %v3136_v52 = vrot.slane %v3102_v39, %v332_v37  ;;  %vm1366_vm10 = vcmask 130048  }
  0x18   :  { %v3139_v53 = vrot.slane %v3109_v40, %v295_v38  ;;  %vm2532_vm11 = vcmask 1041408  }
  0x1b   :  { %286 = vrot.lane.b32.xlu1 %v2972_v2, %s2875_s18  ;;  %284 = vrot.lane.b32.xlu0 %v2958_v0, %s2875_s18 }
  0x1f   :  { %319 = vrot.lane.b32.xlu1 %v2977_v3, %s2876_s0  ;;  %317 = vrot.lane.b32.xlu0 %v2963_v1, %s2876_s0 }
  0x23   :  { %323 = vrot.lane.b32.xlu1 %v2972_v2, %s2876_s0  ;;  %321 = vrot.lane.b32.xlu0 %v2958_v0, %s2876_s0 }
  0x27   :  { %245 = vrot.lane.b32.xlu1 %v2977_v3, %s2877_s19  ;;  %243 = vrot.lane.b32.xlu0 %v2963_v1, %s2877_s19 }
  0x2b   :  { %249 = vrot.lane.b32.xlu1 %v2972_v2, %s2877_s19  ;;  %247 = vrot.lane.b32.xlu0 %v2958_v0, %s2877_s19 }
  0x2f   :  { %147 = vrot.lane.b32.xlu1 %v2977_v3, %s2878_s20  ;;  %145 = vrot.lane.b32.xlu0 %v2963_v1, %s2878_s20 }
  0x33   :  { %151 = vrot.lane.b32.xlu1 %v2972_v2, %s2878_s20  ;;  %149 = vrot.lane.b32.xlu0 %v2958_v0, %s2878_s20 }
  0x37   :  { %184 = vrot.lane.b32.xlu1 %v2977_v3, %s2879_s21  ;;  %182 = vrot.lane.b32.xlu0 %v2963_v1, %s2879_s21 }
  0x3b   :  { %188 = vrot.lane.b32.xlu1 %v2972_v2, %s2879_s21  ;;  %186 = vrot.lane.b32.xlu0 %v2958_v0, %s2879_s21 }
  0x3f   :  { %71 = vrot.lane.b32.xlu1 %v2977_v3, %s2880_s22  ;;  %69 = vrot.lane.b32.xlu0 %v2963_v1, %s2880_s22 }
  0x43   :  { %75 = vrot.lane.b32.xlu1 %v2972_v2, %s2880_s22  ;;  %73 = vrot.lane.b32.xlu0 %v2958_v0, %s2880_s22 }
  0x47   :  { %110 = vrot.lane.b32.xlu1 %v2977_v3, %s2882_s23  ;;  %108 = vrot.lane.b32.xlu0 %v2963_v1, %s2882_s23 }
  0x4b   :  { %114 = vrot.lane.b32.xlu1 %v2972_v2, %s2882_s23  ;;  %112 = vrot.lane.b32.xlu0 %v2958_v0, %s2882_s23 }
  0x4f   :  { %451 = vperm.xlu0 %2754, %v448_v5  }
  0x81   :  { %v359_v8 = vpop.permute.xlu1 %358  ;;  %v355_v9 = vpop.permute.xlu0 %354 }
  0x85   :  { %v361_v14 = vpop.permute.xlu1 %360  ;;  %v357_v15 = vpop.permute.xlu0 %356 }
  0x86   :  { %v363_v16 = vsel %vm362_vm0, %v359_v8, %v361_v14  ;;  %v365_v17 = vsel %vm362_vm0, %v355_v9, %v357_v15  ;;  %v364_v18 = vsel %vm362_vm0, %v357_v15, %v359_v8  ;;  %v366_v19 = vsel %vm362_vm0, %v361_v14, %v355_v9 }
  0x87   :  { %v384_v20 = vmul.f32 %v3052_v10, %v364_v18  ;;  %v386_v21 = vmul.f32 %v3057_v11, %v366_v19  ;;  %v383_v22 = vmul.f32 %v3062_v12, %v365_v17  ;;  %v385_v23 = vmul.f32 %v3067_v13, %v363_v16 }
  0x88   :  { %v3163_v17 = vrot.slane %v3095_v36, %v221_v56  ;;  %v3166_v18 = vrot.slane %v3090_v35, %v221_v56  ;;  %v3169_v19 = vrot.slane %v3109_v40, %v221_v56 }
  0x89   :  { %v283_v24 = vpop.permute.xlu1 %282  ;;  %v281_v25 = vpop.permute.xlu0 %280  ;;  %v444_v26 = vpack.c.bf16 %v384_v20, %v384_v20  ;;  %v446_v27 = vpack.c.bf16 %v386_v21, %v386_v21  ;;  %v443_v28 = vpack.c.bf16 %v383_v22, %v383_v22  ;;  %v445_v29 = vpack.c.bf16 %v385_v23, %v385_v23 }
  0x8a   :  { %v291_v57 = vsel %vm288_vm3, %v281_v25, %v283_v24  ;;  %4249 = vst [vmem:[#allocation10_spill] sm:$0xff] %v3169_v19  ;;  %v236_v37 = vmul.f32 %v3163_v17, %v2977_v3  ;;  %v238_v38 = vmul.f32 %v3166_v18, %v2972_v2 }
  0x8b   :  { %2568 = vmatprep.subr.msk.bf16.mxu0 %vm458_vm1, %v444_v26  ;;  %2570 = vmatprep.subr.msk.bf16.mxu1 %vm458_vm1, %v446_v27  ;;  %v460_v31 = vsel %vm458_vm1, %v443_v28, 0  ;;  %v466_v32 = vsel %vm458_vm1, %v445_v29, 0  ;;  %v309_v16 = vmul.f32 %v3139_v53, %v291_v57  ;;  %v3175_v26 = vrot.slane %v3109_v40, %v258_v55 }
  0x8c   :  { %478 = vmatpush1.bf16.msra.mxu0 %v460_v31  ;;  %519 = vmatpush1.bf16.msra.mxu1 %v466_v32  ;;  %v3178_v28 = vrot.slane %v3090_v35, %v258_v55  ;;  %v3183_v31 = vrot.slane %v3095_v36, %v258_v55  ;;  %v3186_v32 = vrot.slane %v3102_v39, %v258_v55 }
  0x8d   :  { %v287_v33 = vpop.permute.xlu1 %286  ;;  %v285_v34 = vpop.permute.xlu0 %284 }
  0x8e   :  { %v292_v45 = vsel %vm288_vm3, %v287_v33, %v281_v25  ;;  %v290_v46 = vsel %vm288_vm3, %v283_v24, %v285_v34  ;;  %v289_v54 = vsel %vm288_vm3, %v285_v34, %v287_v33  ;;  %v3172_v25 = vrot.slane %v3102_v39, %v221_v56 }
  0x8f   :  { %v312_v58 = vmul.f32 %v3112_v41, %v292_v45  ;;  %v310_v59 = vmul.f32 %v3115_v42, %v290_v46  ;;  %v311_v8 = vmul.f32 %v3122_v47, %v289_v54 }
  0x90   :  { %4250 = vst [vmem:[#allocation11_spill] sm:$0xff] %v3172_v25 }
  0x91   :  { %v320_v43 = vpop.permute.xlu1 %319  ;;  %v318_v44 = vpop.permute.xlu0 %317 }
  0x92   :  { %v328_v49 = vsel %vm325_vm2, %v318_v44, %v320_v43 }
  0x93   :  { %v346_v62 = vmul.f32 %v3125_v48, %v328_v49 }
  0x95   :  { %v324_v60 = vpop.permute.xlu1 %323  ;;  %v322_v61 = vpop.permute.xlu0 %321  ;;  %v439_v27 = vpack.c.bf16 %v346_v62, %v309_v16 }
  0x96   :  { %v329_v63 = vsel %vm325_vm2, %v324_v60, %v318_v44  ;;  %v326_v5 = vsel %vm325_vm2, %v322_v61, %v324_v60  ;;  %v327_v6 = vsel %vm325_vm2, %v320_v43, %v322_v61  ;;  %v235_v43 = vmul.f32 %v3169_v19, %v2963_v1 }
  0x97   :  { %v349_v9 = vmul.f32 %v3130_v50, %v329_v63  ;;  %v347_v14 = vmul.f32 %v3133_v51, %v327_v6  ;;  %v348_v15 = vmul.f32 %v3136_v52, %v326_v5  ;;  %v237_v44 = vmul.f32 %v3172_v25, %v2958_v0 }
  0x98   :  { %v160_v60 = vsub.s32 2, %v3081_v30  ;;  %v197_v61 = vsub.s32 3, %v3081_v30 }
  0x99   :  { %v246_v20 = vpop.permute.xlu1 %245  ;;  %v244_v21 = vpop.permute.xlu0 %243  ;;  %v440_v22 = vpack.c.bf16 %v347_v14, %v310_v59  ;;  %v442_v23 = vpack.c.bf16 %v349_v9, %v312_v58  ;;  %v441_v24 = vpack.c.bf16 %v348_v15, %v311_v8 }
  0x9a   :  { %v254_v29 = vsel %vm251_vm4, %v244_v21, %v246_v20  ;;  %v3210_v5 = vrot.slane %v3095_v36, %v160_v60  ;;  %v3214_v6 = vrot.slane %v3095_v36, %v197_v61  ;;  %v3219_v9 = vrot.slane %v3109_v40, %v160_v60 }
  0x9b   :  { %479 = vmatprep.subr.bf16.mxu0 %v440_v22  ;;  %520 = vmatprep.subr.bf16.mxu1 %v442_v23  ;;  %v272_v45 = vmul.f32 %v3175_v26, %v254_v29  ;;  %v3222_v14 = vrot.slane %v3102_v39, %v160_v60  ;;  %v3225_v15 = vrot.slane %v3090_v35, %v160_v60 }
  0x9c   :  { %480 = vmatpush1.bf16.msra.mxu0 %v439_v27  ;;  %521 = vmatpush1.bf16.msra.mxu1 %v441_v24  ;;  %4251 = vst [vmem:[#allocation12_spill] sm:$0xff] %v3219_v9  ;;  %v3232_v23 = vrot.slane %v3109_v40, %v197_v61  ;;  %v3235_v24 = vrot.slane %v3102_v39, %v197_v61 }
  0x9d   :  { %v250_v33 = vpop.permute.xlu1 %249  ;;  %v248_v34 = vpop.permute.xlu0 %247  ;;  %v435_v59 = vpack.c.bf16 %v272_v45, %v235_v43  ;;  %4252 = vst [vmem:[#allocation13_spill] sm:$0xff] %v3222_v14  ;;  %4253 = vst [vmem:[#allocation14_spill] sm:$0xff] %v3225_v15 }
  0x9e   :  { %v255_v46 = vsel %vm251_vm4, %v250_v33, %v244_v21  ;;  %v252_v49 = vsel %vm251_vm4, %v248_v34, %v250_v33  ;;  %v253_v3 = vsel %vm251_vm4, %v246_v20, %v248_v34  ;;  %v3242_v34 = vrot.slane %v3090_v35, %v197_v61 }
  0x9f   :  { %v275_v54 = vmul.f32 %v3178_v28, %v255_v46  ;;  %v273_v2 = vmul.f32 %v3183_v31, %v253_v3  ;;  %v274_v1 = vmul.f32 %v3186_v32, %v252_v49  ;;  %v86_v61 = vsub.s32 0, %v3081_v30 }
  0xa1   :  { %v148_v55 = vpop.permute.xlu1 %147  ;;  %v146_v56 = vpop.permute.xlu0 %145  ;;  %v436_v0 = vpack.c.bf16 %v273_v2, %v236_v37  ;;  %v438_v57 = vpack.c.bf16 %v275_v54, %v238_v38  ;;  %v437_v58 = vpack.c.bf16 %v274_v1, %v237_v44 }
  0xa2   :  { %v156_v8 = vsel %vm153_vm5, %v146_v56, %v148_v55 }
  0xa3   :  { %481 = vmatprep.subr.bf16.mxu0 %v436_v0  ;;  %522 = vmatprep.subr.bf16.mxu1 %v438_v57  ;;  %v175_v27 = vmul.f32 %v3210_v5, %v156_v8 }
  0xa4   :  { %482 = vmatpush1.bf16.msra.mxu0 %v435_v59  ;;  %523 = vmatpush1.bf16.msra.mxu1 %v437_v58 }
  0xa5   :  { %v152_v62 = vpop.permute.xlu1 %151  ;;  %v150_v63 = vpop.permute.xlu0 %149 }
  0xa6   :  { %v157_v21 = vsel %vm153_vm5, %v152_v62, %v146_v56  ;;  %v155_v29 = vsel %vm153_vm5, %v148_v55, %v150_v63  ;;  %v154_v37 = vsel %vm153_vm5, %v150_v63, %v152_v62  ;;  %v123_v62 = vsub.s32 1, %v3081_v30 }
  0xa7   :  { %v174_v38 = vmul.f32 %v3219_v9, %v157_v21  ;;  %v176_v46 = vmul.f32 %v3222_v14, %v155_v29  ;;  %v177_v2 = vmul.f32 %v3225_v15, %v154_v37  ;;  %v3277_v29 = vrot.slane %v3090_v35, %v86_v61 }
  0xa9   :  { %v185_v16 = vpop.permute.xlu1 %184  ;;  %v183_v20 = vpop.permute.xlu0 %182  ;;  %4258 = vst [vmem:[#allocation19_spill] sm:$0xff] %v3277_v29 }
  0xaa   :  { %v193_v22 = vsel %vm190_vm6, %v183_v20, %v185_v16 }
  0xab   :  { %v212_v33 = vmul.f32 %v3214_v6, %v193_v22  ;;  %v3271_v22 = vrot.slane %v3109_v40, %v86_v61 }
  0xad   :  { %v189_v43 = vpop.permute.xlu1 %188  ;;  %v187_v44 = vpop.permute.xlu0 %186  ;;  %v432_v45 = vpack.c.bf16 %v212_v33, %v175_v27  ;;  %4256 = vst [vmem:[#allocation17_spill] sm:$0xff] %v3271_v22  ;;  %v3274_v27 = vrot.slane %v3102_v39, %v86_v61 }
  0xae   :  { %v194_v49 = vsel %vm190_vm6, %v189_v43, %v183_v20  ;;  %v191_v3 = vsel %vm190_vm6, %v187_v44, %v189_v43  ;;  %v192_v54 = vsel %vm190_vm6, %v185_v16, %v187_v44  ;;  %v3262_v16 = vrot.slane %v3095_v36, %v86_v61 }
  0xaf   :  { %v211_v1 = vmul.f32 %v3232_v23, %v194_v49  ;;  %v213_v55 = vmul.f32 %v3235_v24, %v192_v54  ;;  %v214_v56 = vmul.f32 %v3242_v34, %v191_v3  ;;  %483 = vmatprep.subr.bf16.mxu0 %v432_v45  ;;  %v3266_v20 = vrot.slane %v3095_v36, %v123_v62 }
  0xb0   :  { %4254 = vst [vmem:[#allocation15_spill] sm:$0xff] %v3262_v16  ;;  %4257 = vst [vmem:[#allocation18_spill] sm:$0xff] %v3274_v27  ;;  %v3284_v43 = vrot.slane %v3109_v40, %v123_v62  ;;  %v3287_v44 = vrot.slane %v3102_v39, %v123_v62  ;;  %v3294_v3 = vrot.slane %v3090_v35, %v123_v62 }
  0xb1   :  { %v72_v0 = vpop.permute.xlu1 %71  ;;  %v70_v57 = vpop.permute.xlu0 %69  ;;  %v431_v58 = vpack.c.bf16 %v211_v1, %v174_v38  ;;  %v434_v59 = vpack.c.bf16 %v214_v56, %v177_v2  ;;  %v433_v60 = vpack.c.bf16 %v213_v55, %v176_v46  ;;  %4255 = vst [vmem:[#allocation16_spill] sm:$0xff] %v3266_v20 }
  0xb2   :  { %v82_v21 = vsel %vm79_vm7, %v70_v57, %v72_v0  ;;  %4259 = vst [vmem:[#allocation20_spill] sm:$0xff] %v3284_v43  ;;  %4260 = vst [vmem:[#allocation21_spill] sm:$0xff] %v3287_v44 }
  0xb3   :  { %484 = vmatpush1.bf16.msra.mxu0 %v431_v58  ;;  %524 = vmatprep.subr.bf16.mxu1 %v434_v59  ;;  %v101_v45 = vmul.f32 %v3262_v16, %v82_v21  ;;  %4261 = vst [vmem:[#allocation22_spill] sm:$0xff] %v3294_v3 }
  0xb4   :  { %525 = vmatpush1.bf16.msra.mxu1 %v433_v60 }
  0xb5   :  { %v76_v63 = vpop.permute.xlu1 %75  ;;  %v74_v8 = vpop.permute.xlu0 %73 }
  0xb6   :  { %v83_v38 = vsel %vm79_vm7, %v76_v63, %v70_v57  ;;  %v81_v46 = vsel %vm79_vm7, %v72_v0, %v74_v8  ;;  %v80_v54 = vsel %vm79_vm7, %v74_v8, %v76_v63  ;;  %v447_v8 = vld [vmem:[%s4196_s2] sm:$0xf] }
  0xb7   :  { %v100_v2 = vmul.f32 %v3271_v22, %v83_v38  ;;  %v102_v39 = vmul.f32 %v3274_v27, %v81_v46  ;;  %v103_v57 = vmul.f32 %v3277_v29, %v80_v54 }
  0xb9   :  { %v111_v33 = vpop.permute.xlu1 %110  ;;  %v109_v37 = vpop.permute.xlu0 %108 }
  0xba   :  { %v119_v36 = vsel %vm116_vm8, %v109_v37, %v111_v33 }
  0xbb   :  { %v138_v49 = vmul.f32 %v3266_v20, %v119_v36 }
  0xbd   :  { %v115_v40 = vpop.permute.xlu1 %114  ;;  %v113_v1 = vpop.permute.xlu0 %112  ;;  %v428_v55 = vpack.c.bf16 %v138_v49, %v101_v45 }
  0xbe   :  { %v120_v56 = vsel %vm116_vm8, %v115_v40, %v109_v37  ;;  %v117_v0 = vsel %vm116_vm8, %v113_v1, %v115_v40  ;;  %v118_v35 = vsel %vm116_vm8, %v111_v33, %v113_v1 }
  0xbf   :  { %v137_v58 = vmul.f32 %v3284_v43, %v120_v56  ;;  %v139_v59 = vmul.f32 %v3287_v44, %v118_v35  ;;  %v140_v60 = vmul.f32 %v3294_v3, %v117_v0  ;;  %485 = vmatprep.subr.bf16.mxu0 %v428_v55 }
  0xc1   :  { %v427_v61 = vpack.c.bf16 %v137_v58, %v100_v2  ;;  %v430_v62 = vpack.c.bf16 %v140_v60, %v103_v57  ;;  %v429_v63 = vpack.c.bf16 %v139_v59, %v102_v39  ;;  %v783_v57 = vld [vmem:[%s4199_s5] sm:$0xff]  ;;  %v784_v58 = vld [vmem:[%s4199_s5 + $0x8] sm:$0xff] }
  0xc3   :  { %486 = vmatpush1.bf16.msra.mxu0 %v427_v61  ;;  %526 = vmatprep.subr.bf16.mxu1 %v430_v62 }
  0xc4   :  { %527 = vmatpush1.bf16.msra.mxu1 %v429_v63 }
  0xc6   :  { %2569 = vmatmul.mubr.msk.bf16.vlgmr.msra.gmra.mxu0 %vm454_vm9, %v447_v8 }
  0xc7   :  { %2571 = vmatmul.mubr.msk.bf16.vlgmr.msra.gmra.mxu1 %vm454_vm9, %v447_v8  ;;  %847 = vmatprep.mubr.bf16.mxu0 %v4207_v4 }
  0xc8   :  { %890 = vmatprep.mubr.bf16.mxu1 %v4207_v4 }
  0xca   :  { %v452_v21 = vpop.permute.xlu0 %451 }
 0x186   :  { %v505_v33 = vpop.f32.mrf.mxu0 }
 0x187   :  { %v506_v37 = vadd.f32 %v505_v33, %v452_v21  ;;  %v546_v38 = vpop.f32.mrf.mxu1 }
 0x188   :  { %v547_v36 = vadd.f32 %v546_v38, %v452_v21  ;;  %v507_v45 = vpop.f32.mrf.mxu0 }
 0x189   :  { %v3317_v46 = vmax.f32 %v506_v37, 0.0  ;;  %v508_v49 = vadd.f32 %v507_v45, %v452_v21  ;;  %v548_v54 = vpop.f32.mrf.mxu1 }
 0x18a   :  { %v3319_v2 = vmax.f32 %v547_v36, 0.0  ;;  %v509_v40 = vpop.f32.mrf.mxu0  ;;  %v549_v56 = vadd.f32 %v548_v54, %v452_v21 }
 0x18b   :  { %v550_v1 = vpop.f32.mrf.mxu1  ;;  %705 = vrot.lane.b32.xlu1 %v3317_v46, %s2874_s14  ;;  %v3325_v39 = vmax.f32 %v508_v49, 0.0 }
 0x18c   :  { %709 = vrot.lane.b32.xlu0 %v3319_v2, %s2874_s14  ;;  %v510_v55 = vpop.f32.mrf.mxu0  ;;  %v3331_v35 = vmax.f32 %v549_v56, 0.0 }
 0x18d   :  { %v551_v0 = vpop.f32.mrf.mxu1 }
 0x18f   :  { %707 = vrot.lane.b32.xlu1 %v3325_v39, %s2874_s14 }
 0x190   :  { %665 = vrot.lane.b32.xlu0 %v3317_v46, %s2875_s18 }
 0x193   :  { %711 = vrot.lane.b32.xlu1 %v3331_v35, %s2874_s14 }
 0x194   :  { %669 = vrot.lane.b32.xlu0 %v3319_v2, %s2875_s18 }
 0x197   :  { %667 = vrot.lane.b32.xlu1 %v3325_v39, %s2875_s18 }
 0x198   :  { %685 = vrot.lane.b32.xlu0 %v3317_v46, %s2876_s0 }
 0x19b   :  { %671 = vrot.lane.b32.xlu1 %v3331_v35, %s2875_s18 }
 0x19c   :  { %689 = vrot.lane.b32.xlu0 %v3319_v2, %s2876_s0 }
 0x19f   :  { %687 = vrot.lane.b32.xlu1 %v3325_v39, %s2876_s0 }
 0x1a0   :  { %645 = vrot.lane.b32.xlu0 %v3317_v46, %s2877_s19 }
 0x1a3   :  { %691 = vrot.lane.b32.xlu1 %v3331_v35, %s2876_s0 }
 0x1a4   :  { %649 = vrot.lane.b32.xlu0 %v3319_v2, %s2877_s19 }
 0x1a7   :  { %647 = vrot.lane.b32.xlu1 %v3325_v39, %s2877_s19 }
 0x1a8   :  { %597 = vrot.lane.b32.xlu0 %v3317_v46, %s2878_s20 }
 0x1ab   :  { %651 = vrot.lane.b32.xlu1 %v3331_v35, %s2877_s19 }
 0x1ac   :  { %601 = vrot.lane.b32.xlu0 %v3319_v2, %s2878_s20 }
 0x1af   :  { %599 = vrot.lane.b32.xlu1 %v3325_v39, %s2878_s20 }
 0x1b0   :  { %617 = vrot.lane.b32.xlu0 %v3317_v46, %s2879_s21 }
 0x1b3   :  { %603 = vrot.lane.b32.xlu1 %v3331_v35, %s2878_s20 }
 0x1b4   :  { %621 = vrot.lane.b32.xlu0 %v3319_v2, %s2879_s21 }
 0x1b7   :  { %619 = vrot.lane.b32.xlu1 %v3325_v39, %s2879_s21 }
 0x1b8   :  { %557 = vrot.lane.b32.xlu0 %v3317_v46, %s2880_s22 }
 0x1bb   :  { %623 = vrot.lane.b32.xlu1 %v3331_v35, %s2879_s21 }
 0x1bc   :  { %561 = vrot.lane.b32.xlu0 %v3319_v2, %s2880_s22 }
 0x1bf   :  { %559 = vrot.lane.b32.xlu1 %v3325_v39, %s2880_s22 }
 0x1c0   :  { %577 = vrot.lane.b32.xlu0 %v3317_v46, %s2882_s23 }
 0x1c3   :  { %563 = vrot.lane.b32.xlu1 %v3331_v35, %s2880_s22 }
 0x1c4   :  { %581 = vrot.lane.b32.xlu0 %v3319_v2, %s2882_s23 }
 0x1c7   :  { %579 = vrot.lane.b32.xlu1 %v3325_v39, %s2882_s23 }
 0x1c8   :  { %787 = vperm.xlu0 %2754, %v783_v57  }
 0x1cb   :  { %583 = vrot.lane.b32.xlu1 %v3331_v35, %s2882_s23 }
 0x1cf   :  { %792 = vperm.xlu1 %2755, %v784_v58  }
 0x1fd   :  { %v706_v59 = vpop.permute.xlu1 %705 }
 0x1fe   :  { %v710_v60 = vpop.permute.xlu0 %709 }
 0x201   :  { %v708_v61 = vpop.permute.xlu1 %707 }
 0x202   :  { %v714_v62 = vsel %vm362_vm0, %v708_v61, %v710_v60  ;;  %v715_v63 = vsel %vm362_vm0, %v706_v59, %v708_v61  ;;  %v666_v8 = vpop.permute.xlu0 %665 }
 0x203   :  { %v717_v21 = vmul.f32 %v3062_v12, %v715_v63  ;;  %v718_v33 = vmul.f32 %v3052_v10, %v714_v62 }
 0x205   :  { %v777_v37 = vpack.c.bf16 %v717_v21, %v717_v21  ;;  %v778_v38 = vpack.c.bf16 %v718_v33, %v718_v33  ;;  %v712_v36 = vpop.permute.xlu1 %711 }
 0x206   :  { %v713_v45 = vsel %vm362_vm0, %v710_v60, %v712_v36  ;;  %v716_v49 = vsel %vm362_vm0, %v712_v36, %v706_v59  ;;  %v670_v54 = vpop.permute.xlu0 %669 }
 0x207   :  { %v719_v40 = vmul.f32 %v3067_v13, %v713_v45  ;;  %v720_v1 = vmul.f32 %v3057_v11, %v716_v49  ;;  %2573 = vmatprep.subr.msk.bf16.mxu0 %vm458_vm1, %v778_v38  ;;  %v804_v12 = vsel %vm458_vm1, %v777_v37, 0 }
 0x208   :  { %822 = vmatpush1.bf16.msra.mxu0 %v804_v12 }
 0x209   :  { %v779_v10 = vpack.c.bf16 %v719_v40, %v719_v40  ;;  %v780_v55 = vpack.c.bf16 %v720_v1, %v720_v1  ;;  %v668_v56 = vpop.permute.xlu1 %667 }
 0x20a   :  { %v686_v0 = vpop.permute.xlu0 %685  ;;  %v674_v13 = vsel %vm288_vm3, %v668_v56, %v670_v54  ;;  %v675_v11 = vsel %vm288_vm3, %v666_v8, %v668_v56 }
 0x20b   :  { %2575 = vmatprep.subr.msk.bf16.mxu1 %vm458_vm1, %v780_v55  ;;  %v810_v57 = vsel %vm458_vm1, %v779_v10, 0  ;;  %v677_v21 = vmul.f32 %v675_v11, %v3139_v53  ;;  %v678_v33 = vmul.f32 %v674_v13, %v3115_v42 }
 0x20c   :  { %865 = vmatpush1.bf16.msra.mxu1 %v810_v57 }
 0x20d   :  { %v672_v58 = vpop.permute.xlu1 %671 }
 0x20e   :  { %v690_v59 = vpop.permute.xlu0 %689  ;;  %v673_v36 = vsel %vm288_vm3, %v670_v54, %v672_v58  ;;  %v676_v45 = vsel %vm288_vm3, %v672_v58, %v666_v8 }
 0x20f   :  { %v679_v56 = vmul.f32 %v673_v36, %v3122_v47  ;;  %v680_v57 = vmul.f32 %v676_v45, %v3112_v41 }
 0x211   :  { %v688_v60 = vpop.permute.xlu1 %687 }
 0x212   :  { %v694_v61 = vsel %vm325_vm2, %v688_v60, %v690_v59  ;;  %v695_v62 = vsel %vm325_vm2, %v686_v0, %v688_v60  ;;  %v646_v63 = vpop.permute.xlu0 %645 }
 0x213   :  { %v697_v37 = vmul.f32 %v695_v62, %v3125_v48  ;;  %v698_v38 = vmul.f32 %v694_v61, %v3133_v51  ;;  %v637_v61 = vmul.f32 %v3317_v46, %v3169_v19  ;;  %v639_v46 = vmul.f32 %v3319_v2, %v3172_v25 }
 0x215   :  { %v773_v49 = vpack.c.bf16 %v697_v37, %v677_v21  ;;  %v692_v40 = vpop.permute.xlu1 %691  ;;  %v774_v1 = vpack.c.bf16 %v698_v38, %v678_v33  ;;  %v638_v33 = vmul.f32 %v3325_v39, %v3163_v17  ;;  %v640_v39 = vmul.f32 %v3331_v35, %v3166_v18 }
 0x216   :  { %v693_v12 = vsel %vm325_vm2, %v690_v59, %v692_v40  ;;  %v696_v10 = vsel %vm325_vm2, %v692_v40, %v686_v0  ;;  %v650_v55 = vpop.permute.xlu0 %649 }
 0x217   :  { %v699_v13 = vmul.f32 %v693_v12, %v3136_v52  ;;  %v700_v54 = vmul.f32 %v696_v10, %v3130_v50  ;;  %823 = vmatprep.subr.bf16.mxu0 %v774_v1 }
 0x218   :  { %824 = vmatpush1.bf16.msra.mxu0 %v773_v49 }
 0x219   :  { %v775_v8 = vpack.c.bf16 %v699_v13, %v679_v56  ;;  %v648_v58 = vpop.permute.xlu1 %647  ;;  %v776_v11 = vpack.c.bf16 %v700_v54, %v680_v57 }
 0x21a   :  { %v654_v59 = vsel %vm251_vm4, %v648_v58, %v650_v55  ;;  %v655_v0 = vsel %vm251_vm4, %v646_v63, %v648_v58  ;;  %v598_v60 = vpop.permute.xlu0 %597 }
 0x21b   :  { %v657_v62 = vmul.f32 %v655_v0, %v3175_v26  ;;  %v658_v21 = vmul.f32 %v654_v59, %v3183_v31  ;;  %866 = vmatprep.subr.bf16.mxu1 %v776_v11 }
 0x21c   :  { %867 = vmatpush1.bf16.msra.mxu1 %v775_v8 }
 0x21d   :  { %v769_v37 = vpack.c.bf16 %v657_v62, %v637_v61  ;;  %v652_v38 = vpop.permute.xlu1 %651  ;;  %v770_v36 = vpack.c.bf16 %v658_v21, %v638_v33 }
 0x21e   :  { %v653_v45 = vsel %vm251_vm4, %v650_v55, %v652_v38  ;;  %v656_v49 = vsel %vm251_vm4, %v652_v38, %v646_v63  ;;  %v602_v40 = vpop.permute.xlu0 %601 }
 0x21f   :  { %v659_v1 = vmul.f32 %v653_v45, %v3186_v32  ;;  %v660_v12 = vmul.f32 %v656_v49, %v3178_v28  ;;  %825 = vmatprep.subr.bf16.mxu0 %v770_v36 }
 0x220   :  { %826 = vmatpush1.bf16.msra.mxu0 %v769_v37 }
 0x221   :  { %v771_v10 = vpack.c.bf16 %v659_v1, %v639_v46  ;;  %v600_v56 = vpop.permute.xlu1 %599  ;;  %v772_v57 = vpack.c.bf16 %v660_v12, %v640_v39 }
 0x222   :  { %v618_v55 = vpop.permute.xlu0 %617  ;;  %v607_v2 = vsel %vm153_vm5, %v598_v60, %v600_v56  ;;  %v606_v62 = vsel %vm153_vm5, %v600_v56, %v602_v40 }
 0x223   :  { %868 = vmatprep.subr.bf16.mxu1 %v772_v57  ;;  %v610_v11 = vmul.f32 %v607_v2, %v3210_v5 }
 0x224   :  { %869 = vmatpush1.bf16.msra.mxu1 %v771_v10 }
 0x225   :  { %v604_v63 = vpop.permute.xlu1 %603 }
 0x226   :  { %v622_v13 = vpop.permute.xlu0 %621  ;;  %v605_v0 = vsel %vm153_vm5, %v602_v40, %v604_v63  ;;  %v608_v61 = vsel %vm153_vm5, %v604_v63, %v598_v60  ;;  %v611_v40 = vmul.f32 %v606_v62, %v3222_v14 }
 0x227   :  { %v609_v49 = vmul.f32 %v608_v61, %v3219_v9  ;;  %v612_v46 = vmul.f32 %v605_v0, %v3225_v15 }
 0x229   :  { %v620_v54 = vpop.permute.xlu1 %619 }
 0x22a   :  { %v627_v8 = vsel %vm190_vm6, %v618_v55, %v620_v54  ;;  %v558_v58 = vpop.permute.xlu0 %557  ;;  %v626_v35 = vsel %vm190_vm6, %v620_v54, %v622_v13 }
 0x22b   :  { %v630_v59 = vmul.f32 %v627_v8, %v3214_v6  ;;  %v631_v37 = vmul.f32 %v626_v35, %v3235_v24 }
 0x22d   :  { %v624_v21 = vpop.permute.xlu1 %623  ;;  %v766_v33 = vpack.c.bf16 %v630_v59, %v610_v11  ;;  %v767_v56 = vpack.c.bf16 %v631_v37, %v611_v40 }
 0x22e   :  { %v625_v38 = vsel %vm190_vm6, %v622_v13, %v624_v21  ;;  %v628_v36 = vsel %vm190_vm6, %v624_v21, %v618_v55  ;;  %v562_v45 = vpop.permute.xlu0 %561 }
 0x22f   :  { %v629_v60 = vmul.f32 %v628_v36, %v3232_v23  ;;  %v632_v1 = vmul.f32 %v625_v38, %v3242_v34  ;;  %827 = vmatprep.subr.bf16.mxu0 %v766_v33 }
 0x231   :  { %v765_v12 = vpack.c.bf16 %v629_v60, %v609_v49  ;;  %v560_v39 = vpop.permute.xlu1 %559  ;;  %v768_v10 = vpack.c.bf16 %v632_v1, %v612_v46 }
 0x232   :  { %v578_v57 = vpop.permute.xlu0 %577  ;;  %v567_v63 = vsel %vm79_vm7, %v558_v58, %v560_v39  ;;  %v566_v61 = vsel %vm79_vm7, %v560_v39, %v562_v45 }
 0x233   :  { %828 = vmatpush1.bf16.msra.mxu0 %v765_v12  ;;  %870 = vmatprep.subr.bf16.mxu1 %v768_v10  ;;  %v570_v8 = vmul.f32 %v567_v63, %v3262_v16  ;;  %v2756_v12 = vld [vmem:[%s4198_s4] sm:$0xff]  }
 0x234   :  { %871 = vmatpush1.bf16.msra.mxu1 %v767_v56 }
 0x235   :  { %v564_v55 = vpop.permute.xlu1 %563 }
 0x236   :  { %v582_v2 = vpop.permute.xlu0 %581  ;;  %v565_v59 = vsel %vm79_vm7, %v562_v45, %v564_v55  ;;  %v568_v0 = vsel %vm79_vm7, %v564_v55, %v558_v58  ;;  %v571_v45 = vmul.f32 %v566_v61, %v3274_v27 }
 0x237   :  { %v569_v36 = vmul.f32 %v568_v0, %v3271_v22  ;;  %v572_v49 = vmul.f32 %v565_v59, %v3277_v29 }
 0x239   :  { %v580_v13 = vpop.permute.xlu1 %579 }
 0x23a   :  { %v587_v54 = vsel %vm116_vm8, %v578_v57, %v580_v13  ;;  %v586_v11 = vsel %vm116_vm8, %v580_v13, %v582_v2 }
 0x23b   :  { %v590_v35 = vmul.f32 %v587_v54, %v3266_v20  ;;  %v591_v33 = vmul.f32 %v586_v11, %v3287_v44 }
 0x23d   :  { %v584_v62 = vpop.permute.xlu1 %583  ;;  %v762_v21 = vpack.c.bf16 %v590_v35, %v570_v8  ;;  %v763_v40 = vpack.c.bf16 %v591_v33, %v571_v45 }
 0x23e   :  { %v585_v37 = vsel %vm116_vm8, %v582_v2, %v584_v62  ;;  %v588_v38 = vsel %vm116_vm8, %v584_v62, %v578_v57 }
 0x23f   :  { %v589_v46 = vmul.f32 %v588_v38, %v3284_v43  ;;  %v592_v58 = vmul.f32 %v585_v37, %v3294_v3  ;;  %829 = vmatprep.subr.bf16.mxu0 %v762_v21 }
 0x241   :  { %v761_v60 = vpack.c.bf16 %v589_v46, %v569_v36  ;;  %v764_v1 = vpack.c.bf16 %v592_v58, %v572_v49 }
 0x243   :  { %830 = vmatpush1.bf16.msra.mxu0 %v761_v60  ;;  %872 = vmatprep.subr.bf16.mxu1 %v764_v1  ;;  %v788_v39 = vpop.permute.xlu0 %787 }
 0x244   :  { %873 = vmatpush1.bf16.msra.mxu1 %v763_v40 }
 0x246   :  { %2574 = vmatmul.mubr.msk.bf16.vlgmr.msra.gmra.mxu0 %vm454_vm9, %v2756_v12 }
 0x247   :  { %2576 = vmatmul.mubr.msk.bf16.vlgmr.msra.gmra.mxu1 %vm454_vm9, %v2756_v12 }
 0x24a   :  { %v793_v13 = vpop.permute.xlu1 %792 }
 0x306   :  { %v849_v10 = vpop.f32.mrf.mxu0 }
 0x307   :  { %v850_v56 = vadd.f32 %v849_v10, %v788_v39  ;;  %v892_v57 = vpop.f32.mrf.mxu1 }
 0x308   :  { %v893_v55 = vadd.f32 %v892_v57, %v788_v39  ;;  %v851_v63 = vpop.f32.mrf.mxu0 }
 0x309   :  { %v901_v2 = vmax.f32 %v850_v56, 0.0  ;;  %v894_v54 = vpop.f32.mrf.mxu1  ;;  %v852_v46 = vadd.f32 %v851_v63, %v788_v39 }
 0x30a   :  { %v853_v8 = vpop.f32.mrf.mxu0  ;;  %v903_v59 = vmax.f32 %v893_v55, 0.0  ;;  %v895_v60 = vadd.f32 %v894_v54, %v788_v39  ;;  %v3621_v55 = vld [vmem:[%s4200_s6] sm:$0xff] }
 0x30b   :  { %v854_v11 = vadd.f32 %v853_v8, %v793_v13  ;;  %v896_v35 = vpop.f32.mrf.mxu1  ;;  %1165 = vrot.lane.b32.xlu0 %v901_v2, %s2876_s0  ;;  %v3512_v21 = vmul.f32 %v901_v2, %v3169_v19  ;;  %v3555_v45 = vmax.f32 %v852_v46, 0.0  ;;  %4262 = vst [vmem:[#allocation23_spill] sm:$0xff] %v3621_v55 }
 0x30c   :  { %v897_v0 = vadd.f32 %v896_v35, %v793_v13  ;;  %v3518_v37 = vmul.f32 %v903_v59, %v3172_v25  ;;  %v855_v58 = vpop.f32.mrf.mxu0  ;;  %v3560_v12 = vmax.f32 %v895_v60, 0.0 }
 0x30d   :  { %v905_v61 = vmax.f32 %v854_v11, 0.0  ;;  %v856_v1 = vadd.f32 %v855_v58, %v793_v13  ;;  %v898_v40 = vpop.f32.mrf.mxu1  ;;  %v1354_v11 = vld [vmem:[%s4201_s7] sm:$0xff] }
 0x30e   :  { %v907_v62 = vmax.f32 %v897_v0, 0.0  ;;  %v899_v56 = vadd.f32 %v898_v40, %v793_v13 }
 0x30f   :  { %1167 = vrot.lane.b32.xlu1 %v905_v61, %s2876_s0  ;;  %1173 = vrot.lane.b32.xlu0 %v903_v59, %s2876_s0  ;;  %v3515_v33 = vmul.f32 %v905_v61, %v3169_v19  ;;  %v3562_v10 = vmax.f32 %v856_v1, 0.0 }
 0x310   :  { %v3521_v38 = vmul.f32 %v907_v62, %v3172_v25  ;;  %v3568_v57 = vmax.f32 %v899_v56, 0.0 }
 0x313   :  { %1175 = vrot.lane.b32.xlu1 %v907_v62, %s2876_s0  ;;  %1125 = vrot.lane.b32.xlu0 %v901_v2, %s2875_s18 }
 0x317   :  { %1127 = vrot.lane.b32.xlu1 %v905_v61, %s2875_s18  ;;  %1133 = vrot.lane.b32.xlu0 %v903_v59, %s2875_s18 }
 0x31b   :  { %1135 = vrot.lane.b32.xlu1 %v907_v62, %s2875_s18  ;;  %1085 = vrot.lane.b32.xlu0 %v901_v2, %s2877_s19 }
 0x31f   :  { %1087 = vrot.lane.b32.xlu1 %v905_v61, %s2877_s19  ;;  %1093 = vrot.lane.b32.xlu0 %v903_v59, %s2877_s19 }
 0x323   :  { %1095 = vrot.lane.b32.xlu1 %v907_v62, %s2877_s19  ;;  %1029 = vrot.lane.b32.xlu0 %v901_v2, %s2879_s21 }
 0x327   :  { %1031 = vrot.lane.b32.xlu1 %v905_v61, %s2879_s21  ;;  %1037 = vrot.lane.b32.xlu0 %v903_v59, %s2879_s21 }
 0x32b   :  { %1039 = vrot.lane.b32.xlu1 %v907_v62, %s2879_s21  ;;  %989 = vrot.lane.b32.xlu0 %v901_v2, %s2878_s20 }
 0x32f   :  { %991 = vrot.lane.b32.xlu1 %v905_v61, %s2878_s20  ;;  %997 = vrot.lane.b32.xlu0 %v903_v59, %s2878_s20 }
 0x333   :  { %999 = vrot.lane.b32.xlu1 %v907_v62, %s2878_s20  ;;  %949 = vrot.lane.b32.xlu0 %v901_v2, %s2882_s23 }
 0x337   :  { %951 = vrot.lane.b32.xlu1 %v905_v61, %s2882_s23  ;;  %957 = vrot.lane.b32.xlu0 %v903_v59, %s2882_s23 }
 0x33b   :  { %959 = vrot.lane.b32.xlu1 %v907_v62, %s2882_s23  ;;  %909 = vrot.lane.b32.xlu0 %v901_v2, %s2880_s22 }
 0x33f   :  { %911 = vrot.lane.b32.xlu1 %v905_v61, %s2880_s22  ;;  %917 = vrot.lane.b32.xlu0 %v903_v59, %s2880_s22 }
 0x343   :  { %919 = vrot.lane.b32.xlu1 %v907_v62, %s2880_s22  ;;  %1205 = vrot.lane.b32.xlu0 %v901_v2, %s2874_s14  ;;  %v2578_v2 = vcombine.high %v3621_v55, %v3621_v55 }
 0x345   :  { %2579 = vmatprep.mubr.msk.bf16.mxu0 %vm1366_vm10, %v2578_v2  ;;  %2580 = vmatprep.mubr.msk.bf16.mxu1 %vm1366_vm10, %v2578_v2 }
 0x347   :  { %1207 = vrot.lane.b32.xlu1 %v905_v61, %s2874_s14  ;;  %1213 = vrot.lane.b32.xlu0 %v903_v59, %s2874_s14 }
 0x34b   :  { %1215 = vrot.lane.b32.xlu1 %v907_v62, %s2874_s14  ;;  %1169 = vrot.lane.b32.xlu0 %v3555_v45, %s2876_s0 }
 0x34f   :  { %1171 = vrot.lane.b32.xlu1 %v3562_v10, %s2876_s0  ;;  %1177 = vrot.lane.b32.xlu0 %v3560_v12, %s2876_s0 }
 0x353   :  { %1179 = vrot.lane.b32.xlu1 %v3568_v57, %s2876_s0  ;;  %1129 = vrot.lane.b32.xlu0 %v3555_v45, %s2875_s18 }
 0x357   :  { %1131 = vrot.lane.b32.xlu1 %v3562_v10, %s2875_s18  ;;  %1137 = vrot.lane.b32.xlu0 %v3560_v12, %s2875_s18 }
 0x35b   :  { %1139 = vrot.lane.b32.xlu1 %v3568_v57, %s2875_s18  ;;  %1089 = vrot.lane.b32.xlu0 %v3555_v45, %s2877_s19 }
 0x35f   :  { %1091 = vrot.lane.b32.xlu1 %v3562_v10, %s2877_s19  ;;  %1097 = vrot.lane.b32.xlu0 %v3560_v12, %s2877_s19 }
 0x363   :  { %1099 = vrot.lane.b32.xlu1 %v3568_v57, %s2877_s19  ;;  %1033 = vrot.lane.b32.xlu0 %v3555_v45, %s2879_s21 }
 0x367   :  { %1035 = vrot.lane.b32.xlu1 %v3562_v10, %s2879_s21  ;;  %1041 = vrot.lane.b32.xlu0 %v3560_v12, %s2879_s21 }
 0x36b   :  { %1043 = vrot.lane.b32.xlu1 %v3568_v57, %s2879_s21  ;;  %993 = vrot.lane.b32.xlu0 %v3555_v45, %s2878_s20 }
 0x36f   :  { %995 = vrot.lane.b32.xlu1 %v3562_v10, %s2878_s20  ;;  %1001 = vrot.lane.b32.xlu0 %v3560_v12, %s2878_s20 }
 0x373   :  { %1003 = vrot.lane.b32.xlu1 %v3568_v57, %s2878_s20  ;;  %953 = vrot.lane.b32.xlu0 %v3555_v45, %s2882_s23 }
 0x377   :  { %955 = vrot.lane.b32.xlu1 %v3562_v10, %s2882_s23  ;;  %961 = vrot.lane.b32.xlu0 %v3560_v12, %s2882_s23 }
 0x37b   :  { %963 = vrot.lane.b32.xlu1 %v3568_v57, %s2882_s23  ;;  %913 = vrot.lane.b32.xlu0 %v3555_v45, %s2880_s22 }
 0x37d   :  { %v1166_v39 = vpop.permute.xlu0 %1165 }
 0x37f   :  { %915 = vrot.lane.b32.xlu1 %v3562_v10, %s2880_s22  ;;  %921 = vrot.lane.b32.xlu0 %v3560_v12, %s2880_s22 }
 0x381   :  { %v1168_v63 = vpop.permute.xlu1 %1167  ;;  %v1174_v13 = vpop.permute.xlu0 %1173 }
 0x383   :  { %923 = vrot.lane.b32.xlu1 %v3568_v57, %s2880_s22  ;;  %1209 = vrot.lane.b32.xlu0 %v3555_v45, %s2874_s14 }
 0x385   :  { %v1176_v54 = vpop.permute.xlu1 %1175  ;;  %v3629_v8 = vpop.permute.xlu0 %1125 }
 0x387   :  { %1211 = vrot.lane.b32.xlu1 %v3562_v10, %s2874_s14  ;;  %1217 = vrot.lane.b32.xlu0 %v3560_v12, %s2874_s14 }
 0x389   :  { %v3638_v35 = vpop.permute.xlu1 %1127  ;;  %v3640_v59 = vpop.permute.xlu0 %1133 }
 0x38b   :  { %1219 = vrot.lane.b32.xlu1 %v3568_v57, %s2874_s14  ;;  %1357 = vperm.xlu0 %2754, %v1354_v11  }
 0x38d   :  { %v3644_v0 = vpop.permute.xlu1 %1135  ;;  %v3646_v61 = vpop.permute.xlu0 %1085 }
 0x391   :  { %v3648_v62 = vpop.permute.xlu1 %1087  ;;  %v3650_v46 = vpop.permute.xlu0 %1093 }
 0x395   :  { %v3652_v58 = vpop.permute.xlu1 %1095  ;;  %v3654_v60 = vpop.permute.xlu0 %1029 }
 0x399   :  { %v3656_v1 = vpop.permute.xlu1 %1031  ;;  %v3658_v40 = vpop.permute.xlu0 %1037 }
 0x39d   :  { %v3660_v56 = vpop.permute.xlu1 %1039  ;;  %v3662_v2 = vpop.permute.xlu0 %989 }
 0x3a1   :  { %v3664_v11 = vpop.permute.xlu1 %991  ;;  %v3666_v4 = vpop.permute.xlu0 %997 }
 0x3a5   :  { %v3668_v49 = vpop.permute.xlu1 %999  ;;  %v3670_v36 = vpop.permute.xlu0 %949 }
 0x3a6   :  { %4263 = vst [vmem:[#allocation24_spill] sm:$0xff] %v3670_v36 }
 0x3a9   :  { %v3672_v30 = vpop.permute.xlu1 %951  ;;  %v3674_v25 = vpop.permute.xlu0 %957 }
 0x3aa   :  { %4264 = vst [vmem:[#allocation25_spill] sm:$0xff] %v3672_v30  ;;  %4265 = vst [vmem:[#allocation26_spill] sm:$0xff] %v3674_v25 }
 0x3ad   :  { %v3676_v19 = vpop.permute.xlu1 %959  ;;  %v3678_v55 = vpop.permute.xlu0 %909 }
 0x3ae   :  { %4266 = vst [vmem:[#allocation27_spill] sm:$0xff] %v3676_v19  ;;  %4267 = vst [vmem:[#allocation28_spill] sm:$0xff] %v3678_v55 }
 0x3b1   :  { %v3680_v29 = vpop.permute.xlu1 %911  ;;  %v3682_v22 = vpop.permute.xlu0 %917 }
 0x3b2   :  { %4268 = vst [vmem:[#allocation29_spill] sm:$0xff] %v3680_v29  ;;  %4269 = vst [vmem:[#allocation30_spill] sm:$0xff] %v3682_v22 }
 0x3b5   :  { %v3684_v27 = vpop.permute.xlu1 %919  ;;  %v3686_v16 = vpop.permute.xlu0 %1205 }
 0x3b6   :  { %4270 = vst [vmem:[#allocation31_spill] sm:$0xff] %v3684_v27  ;;  %4271 = vst [vmem:[#allocation32_spill] sm:$0xff] %v3686_v16 }
 0x3b9   :  { %v3688_v3 = vpop.permute.xlu1 %1207  ;;  %v3690_v43 = vpop.permute.xlu0 %1213 }
 0x3ba   :  { %4272 = vst [vmem:[#allocation33_spill] sm:$0xff] %v3688_v3  ;;  %4273 = vst [vmem:[#allocation34_spill] sm:$0xff] %v3690_v43 }
 0x3bd   :  { %v3692_v44 = vpop.permute.xlu1 %1215  ;;  %v1170_v20 = vpop.permute.xlu0 %1169 }
 0x3be   :  { %4274 = vst [vmem:[#allocation35_spill] sm:$0xff] %v3692_v44  ;;  %v1183_v30 = vsel %vm325_vm2, %v1170_v20, %v1174_v13  ;;  %v1185_v55 = vsel %vm325_vm2, %v1166_v39, %v1170_v20 }
 0x3bf   :  { %v1189_v3 = vmul.f32 %v1185_v55, %v3125_v48  ;;  %v1190_v43 = vmul.f32 %v1183_v30, %v3133_v51 }
 0x3c1   :  { %v1172_v29 = vpop.permute.xlu1 %1171  ;;  %v1178_v19 = vpop.permute.xlu0 %1177 }
 0x3c2   :  { %v1184_v27 = vsel %vm325_vm2, %v1172_v29, %v1176_v54  ;;  %v1186_v16 = vsel %vm325_vm2, %v1168_v63, %v1172_v29  ;;  %v1181_v36 = vsel %vm325_vm2, %v1174_v13, %v1178_v19  ;;  %v1187_v20 = vsel %vm325_vm2, %v1178_v19, %v1166_v39 }
 0x3c3   :  { %v1193_v44 = vmul.f32 %v1186_v16, %v3125_v48  ;;  %v1194_v22 = vmul.f32 %v1184_v27, %v3133_v51  ;;  %v1191_v16 = vmul.f32 %v1181_v36, %v3136_v52  ;;  %v1192_v27 = vmul.f32 %v1187_v20, %v3130_v50 }
 0x3c5   :  { %v1345_v25 = vpack.c.bf16 %v1193_v44, %v1189_v3  ;;  %v1180_v15 = vpop.permute.xlu1 %1179  ;;  %v1130_v9 = vpop.permute.xlu0 %1129  ;;  %v1346_v14 = vpack.c.bf16 %v1194_v22, %v1190_v43 }
 0x3c6   :  { %v1182_v29 = vsel %vm325_vm2, %v1176_v54, %v1180_v15  ;;  %v1188_v30 = vsel %vm325_vm2, %v1180_v15, %v1168_v63  ;;  %v1143_v19 = vsel %vm288_vm3, %v1130_v9, %v3640_v59  ;;  %v1145_v22 = vsel %vm288_vm3, %v3629_v8, %v1130_v9 }
 0x3c7   :  { %v1195_v55 = vmul.f32 %v1182_v29, %v3136_v52  ;;  %v1196_v13 = vmul.f32 %v1188_v30, %v3130_v50  ;;  %1370 = vmatprep.subr.bf16.mxu0 %v1346_v14  ;;  %v1149_v39 = vmul.f32 %v1145_v22, %v3139_v53  ;;  %v1150_v63 = vmul.f32 %v1143_v19, %v3115_v42 }
 0x3c8   :  { %1371 = vmatpush1.bf16.msra.mxu0 %v1345_v25 }
 0x3c9   :  { %v1347_v43 = vpack.c.bf16 %v1195_v55, %v1191_v16  ;;  %v1132_v15 = vpop.permute.xlu1 %1131  ;;  %v1138_v44 = vpop.permute.xlu0 %1137  ;;  %v1348_v3 = vpack.c.bf16 %v1196_v13, %v1192_v27 }
 0x3ca   :  { %v1144_v36 = vsel %vm288_vm3, %v1132_v15, %v3644_v0  ;;  %v1146_v14 = vsel %vm288_vm3, %v3638_v35, %v1132_v15  ;;  %v1141_v9 = vsel %vm288_vm3, %v3640_v59, %v1138_v44  ;;  %v1147_v20 = vsel %vm288_vm3, %v1138_v44, %v3629_v8 }
 0x3cb   :  { %v1153_v54 = vmul.f32 %v1146_v14, %v3139_v53  ;;  %v1154_v25 = vmul.f32 %v1144_v36, %v3115_v42  ;;  %1411 = vmatprep.subr.bf16.mxu1 %v1348_v3  ;;  %v1151_v19 = vmul.f32 %v1141_v9, %v3122_v47  ;;  %v1152_v59 = vmul.f32 %v1147_v20, %v3112_v41 }
 0x3cc   :  { %1412 = vmatpush1.bf16.msra.mxu1 %v1347_v43 }
 0x3cd   :  { %v1341_v29 = vpack.c.bf16 %v1153_v54, %v1149_v39  ;;  %v1140_v30 = vpop.permute.xlu1 %1139  ;;  %v1090_v16 = vpop.permute.xlu0 %1089  ;;  %v1342_v27 = vpack.c.bf16 %v1154_v25, %v1150_v63  ;;  %v1074_v39 = vmul.f32 %v3562_v10, %v3163_v17  ;;  %v1070_v10 = vmul.f32 %v3555_v45, %v3163_v17 }
 0x3ce   :  { %v1142_v55 = vsel %vm288_vm3, %v3644_v0, %v1140_v30  ;;  %v1148_v13 = vsel %vm288_vm3, %v1140_v30, %v3638_v35  ;;  %v1103_v43 = vsel %vm251_vm4, %v1090_v16, %v3650_v46  ;;  %v1105_v0 = vsel %vm251_vm4, %v3646_v61, %v1090_v16 }
 0x3cf   :  { %v1155_v22 = vmul.f32 %v1142_v55, %v3122_v47  ;;  %v1156_v8 = vmul.f32 %v1148_v13, %v3112_v41  ;;  %1372 = vmatprep.subr.bf16.mxu0 %v1342_v27  ;;  %v1109_v63 = vmul.f32 %v1105_v0, %v3175_v26  ;;  %v1110_v54 = vmul.f32 %v1103_v43, %v3183_v31 }
 0x3d0   :  { %1373 = vmatpush1.bf16.msra.mxu0 %v1341_v29 }
 0x3d1   :  { %v1343_v15 = vpack.c.bf16 %v1155_v22, %v1151_v19  ;;  %v1092_v35 = vpop.permute.xlu1 %1091  ;;  %v1098_v44 = vpop.permute.xlu0 %1097  ;;  %v1344_v3 = vpack.c.bf16 %v1156_v8, %v1152_v59  ;;  %v1334_v19 = vpack.c.bf16 %v1074_v39, %v1070_v10 }
 0x3d2   :  { %v1104_v36 = vsel %vm251_vm4, %v1092_v35, %v3652_v58  ;;  %v1106_v14 = vsel %vm251_vm4, %v3648_v62, %v1092_v35  ;;  %v1101_v20 = vsel %vm251_vm4, %v3650_v46, %v1098_v44  ;;  %v1107_v29 = vsel %vm251_vm4, %v1098_v44, %v3646_v61 }
 0x3d3   :  { %v1113_v25 = vmul.f32 %v1106_v14, %v3175_v26  ;;  %v1114_v9 = vmul.f32 %v1104_v36, %v3183_v31  ;;  %1413 = vmatprep.subr.bf16.mxu1 %v1344_v3  ;;  %v1076_v61 = vmul.f32 %v3568_v57, %v3166_v18  ;;  %v1111_v59 = vmul.f32 %v1101_v20, %v3186_v32 }
 0x3d4   :  { %1414 = vmatpush1.bf16.msra.mxu1 %v1343_v15  ;;  %v1112_v45 = vmul.f32 %v1107_v29, %v3178_v28  ;;  %v1072_v57 = vmul.f32 %v3560_v12, %v3166_v18 }
 0x3d5   :  { %v1337_v30 = vpack.c.bf16 %v1113_v25, %v1109_v63  ;;  %v1100_v16 = vpop.permute.xlu1 %1099  ;;  %v1034_v27 = vpop.permute.xlu0 %1033  ;;  %v1338_v55 = vpack.c.bf16 %v1114_v9, %v1110_v54  ;;  %v4275_v9 = vpack.c.bf16 %v3515_v33, %v3512_v21 }
 0x3d6   :  { %v1102_v13 = vsel %vm251_vm4, %v3652_v58, %v1100_v16  ;;  %v1108_v46 = vsel %vm251_vm4, %v1100_v16, %v3648_v62  ;;  %v1047_v58 = vsel %vm190_vm6, %v1034_v27, %v3658_v40  ;;  %v1049_v62 = vsel %vm190_vm6, %v3654_v60, %v1034_v27 }
 0x3d7   :  { %v1115_v22 = vmul.f32 %v1102_v13, %v3186_v32  ;;  %v1116_v8 = vmul.f32 %v1108_v46, %v3178_v28  ;;  %1374 = vmatprep.subr.bf16.mxu0 %v1338_v55  ;;  %v1336_v36 = vpack.c.bf16 %v1076_v61, %v1072_v57  ;;  %v1054_v14 = vmul.f32 %v1049_v62, %v3214_v6 }
 0x3d8   :  { %1375 = vmatpush1.bf16.msra.mxu0 %v1337_v30  ;;  %v1055_v39 = vmul.f32 %v1047_v58, %v3235_v24 }
 0x3d9   :  { %v1339_v43 = vpack.c.bf16 %v1115_v22, %v1111_v59  ;;  %v1036_v0 = vpop.permute.xlu1 %1035  ;;  %1376 = vmatprep.subr.bf16.mxu0 %v1334_v19  ;;  %v1042_v15 = vpop.permute.xlu0 %1041  ;;  %v1340_v35 = vpack.c.bf16 %v1116_v8, %v1112_v45  ;;  %v4277_v8 = vld [vmem:[#allocation13_spill] sm:$0xff] }
 0x3da   :  { %v1048_v44 = vsel %vm190_vm6, %v1036_v0, %v3660_v56  ;;  %v1050_v3 = vsel %vm190_vm6, %v3656_v1, %v1036_v0  ;;  %v1045_v54 = vsel %vm190_vm6, %v3658_v40, %v1042_v15  ;;  %v1051_v25 = vsel %vm190_vm6, %v1042_v15, %v3654_v60 }
 0x3db   :  { %v1058_v12 = vmul.f32 %v1050_v3, %v3214_v6  ;;  %v1059_v63 = vmul.f32 %v1048_v44, %v3235_v24  ;;  %1415 = vmatprep.subr.bf16.mxu1 %v1340_v35  ;;  %v1053_v60 = vmul.f32 %v1051_v25, %v3232_v23  ;;  %v1056_v27 = vmul.f32 %v1045_v54, %v3242_v34  ;;  %v4281_v25 = vld [vmem:[#allocation24_spill] sm:$0xff] }
 0x3dc   :  { %1377 = vmatpush1.bf16.msra.mxu0 %v4275_v9  ;;  %1416 = vmatpush1.bf16.msra.mxu1 %v1339_v43 }
 0x3dd   :  { %v1331_v20 = vpack.c.bf16 %v1059_v63, %v1055_v39  ;;  %v1044_v29 = vpop.permute.xlu1 %1043  ;;  %1417 = vmatprep.subr.bf16.mxu1 %v1336_v36  ;;  %v994_v10 = vpop.permute.xlu0 %993  ;;  %v1330_v30 = vpack.c.bf16 %v1058_v12, %v1054_v14  ;;  %v4278_v36 = vld [vmem:[#allocation12_spill] sm:$0xff]  ;;  %v4279_v14 = vld [vmem:[#allocation14_spill] sm:$0xff] }
 0x3de   :  { %v1046_v16 = vsel %vm190_vm6, %v3660_v56, %v1044_v29  ;;  %v1052_v40 = vsel %vm190_vm6, %v1044_v29, %v3656_v1  ;;  %v1007_v55 = vsel %vm153_vm5, %v994_v10, %v3666_v4  ;;  %v1009_v56 = vsel %vm153_vm5, %v3662_v2, %v994_v10  ;;  %v4280_v63 = vld [vmem:[#allocation26_spill] sm:$0xff]  ;;  %v4282_v10 = vld [vmem:[#allocation27_spill] sm:$0xff] }
 0x3df   :  { %v1057_v21 = vmul.f32 %v1052_v40, %v3232_v23  ;;  %v1060_v33 = vmul.f32 %v1046_v16, %v3242_v34  ;;  %1378 = vmatprep.subr.bf16.mxu0 %v1330_v30  ;;  %v4276_v1 = vpack.c.bf16 %v3521_v38, %v3518_v37  ;;  %v1014_v22 = vmul.f32 %v1009_v56, %v3210_v5  ;;  %v4283_v16 = vld [vmem:[#allocation25_spill] sm:$0xff] }
 0x3e0   :  { %v1015_v58 = vmul.f32 %v1007_v55, %v4277_v8 }
 0x3e1   :  { %1418 = vmatpush1.bf16.msra.mxu1 %v4276_v1  ;;  %v1329_v13 = vpack.c.bf16 %v1057_v21, %v1053_v60  ;;  %v996_v46 = vpop.permute.xlu1 %995  ;;  %v1002_v19 = vpop.permute.xlu0 %1001  ;;  %v1332_v61 = vpack.c.bf16 %v1060_v33, %v1056_v27  ;;  %v4284_v60 = vld [vmem:[#allocation16_spill] sm:$0xff]  ;;  %v4285_v21 = vld [vmem:[#allocation21_spill] sm:$0xff] }
 0x3e2   :  { %v1008_v59 = vsel %vm153_vm5, %v996_v46, %v3668_v49  ;;  %v1010_v45 = vsel %vm153_vm5, %v3664_v11, %v996_v46  ;;  %v1005_v38 = vsel %vm153_vm5, %v3666_v4, %v1002_v19  ;;  %v1011_v57 = vsel %vm153_vm5, %v1002_v19, %v3662_v2 }
 0x3e3   :  { %v1018_v62 = vmul.f32 %v1010_v45, %v3210_v5  ;;  %v1019_v37 = vmul.f32 %v1008_v59, %v4277_v8  ;;  %1379 = vmatpush1.bf16.msra.mxu0 %v1329_v13  ;;  %1419 = vmatprep.subr.bf16.mxu1 %v1332_v61  ;;  %v1013_v4 = vmul.f32 %v1011_v57, %v4278_v36 }
 0x3e4   :  { %v1016_v39 = vmul.f32 %v1005_v38, %v4279_v14 }
 0x3e5   :  { %v1327_v43 = vpack.c.bf16 %v1019_v37, %v1015_v58  ;;  %1420 = vmatpush1.bf16.msra.mxu1 %v1331_v20  ;;  %v1004_v0 = vpop.permute.xlu1 %1003  ;;  %v954_v15 = vpop.permute.xlu0 %953  ;;  %v1326_v35 = vpack.c.bf16 %v1018_v62, %v1014_v22  ;;  %v4286_v58 = vld [vmem:[#allocation20_spill] sm:$0xff]  ;;  %v4287_v37 = vld [vmem:[#allocation22_spill] sm:$0xff] }
 0x3e6   :  { %v1006_v44 = vsel %vm153_vm5, %v3668_v49, %v1004_v0  ;;  %v1012_v3 = vsel %vm153_vm5, %v1004_v0, %v3664_v11  ;;  %v967_v54 = vsel %vm116_vm8, %v954_v15, %v4280_v63  ;;  %v969_v49 = vsel %vm116_vm8, %v4281_v25, %v954_v15 }
 0x3e7   :  { %v1017_v2 = vmul.f32 %v1012_v3, %v4278_v36  ;;  %v1020_v12 = vmul.f32 %v1006_v44, %v4279_v14  ;;  %1380 = vmatprep.subr.bf16.mxu0 %v1326_v35  ;;  %v974_v27 = vmul.f32 %v969_v49, %v4284_v60  ;;  %v975_v33 = vmul.f32 %v967_v54, %v4285_v21  ;;  %v4289_v35 = vld [vmem:[#allocation28_spill] sm:$0xff]  ;;  %v4291_v54 = vld [vmem:[#allocation29_spill] sm:$0xff]  ;;  %v4292_v49 = vld [vmem:[#allocation15_spill] sm:$0xff] }
 0x3e9   :  { %v1325_v9 = vpack.c.bf16 %v1017_v2, %v1013_v4  ;;  %v956_v20 = vpop.permute.xlu1 %955  ;;  %v962_v11 = vpop.permute.xlu0 %961  ;;  %v1328_v29 = vpack.c.bf16 %v1020_v12, %v1016_v39  ;;  %v4290_v12 = vld [vmem:[#allocation31_spill] sm:$0xff] }
 0x3ea   :  { %v968_v30 = vsel %vm116_vm8, %v956_v20, %v4282_v10  ;;  %v970_v40 = vsel %vm116_vm8, %v4283_v16, %v956_v20  ;;  %v965_v1 = vsel %vm116_vm8, %v4280_v63, %v962_v11  ;;  %v971_v13 = vsel %vm116_vm8, %v962_v11, %v4281_v25  ;;  %v4293_v20 = vld [vmem:[#allocation18_spill] sm:$0xff] }
 0x3eb   :  { %v978_v55 = vmul.f32 %v970_v40, %v4284_v60  ;;  %v979_v56 = vmul.f32 %v968_v30, %v4285_v21  ;;  %1381 = vmatpush1.bf16.msra.mxu0 %v1325_v9  ;;  %1421 = vmatprep.subr.bf16.mxu1 %v1328_v29  ;;  %v973_v62 = vmul.f32 %v971_v13, %v4286_v58  ;;  %v4294_v13 = vld [vmem:[#allocation17_spill] sm:$0xff] }
 0x3ec   :  { %1422 = vmatpush1.bf16.msra.mxu1 %v1327_v43  ;;  %v976_v38 = vmul.f32 %v965_v1, %v4287_v37  ;;  %v4288_v43 = vld [vmem:[#allocation30_spill] sm:$0xff] }
 0x3ed   :  { %v1323_v46 = vpack.c.bf16 %v979_v56, %v975_v33  ;;  %v964_v19 = vpop.permute.xlu1 %963  ;;  %v914_v61 = vpop.permute.xlu0 %913  ;;  %v1322_v59 = vpack.c.bf16 %v978_v55, %v974_v27 }
 0x3ee   :  { %v966_v45 = vsel %vm116_vm8, %v4282_v10, %v964_v19  ;;  %v972_v22 = vsel %vm116_vm8, %v964_v19, %v4283_v16  ;;  %v927_v15 = vsel %vm79_vm7, %v914_v61, %v4288_v43  ;;  %v929_v44 = vsel %vm79_vm7, %v4289_v35, %v914_v61  ;;  %v4295_v61 = vld [vmem:[#allocation19_spill] sm:$0xff] }
 0x3ef   :  { %v977_v57 = vmul.f32 %v972_v22, %v4286_v58  ;;  %v980_v0 = vmul.f32 %v966_v45, %v4287_v37  ;;  %1382 = vmatprep.subr.bf16.mxu0 %v1322_v59  ;;  %v934_v9 = vmul.f32 %v929_v44, %v4292_v49  ;;  %v935_v11 = vmul.f32 %v927_v15, %v4293_v20  ;;  %v4298_v44 = vld [vmem:[#allocation35_spill] sm:$0xff] }
 0x3f1   :  { %v1321_v3 = vpack.c.bf16 %v977_v57, %v973_v62  ;;  %v916_v4 = vpop.permute.xlu1 %915  ;;  %v922_v39 = vpop.permute.xlu0 %921  ;;  %v1324_v2 = vpack.c.bf16 %v980_v0, %v976_v38  ;;  %v4297_v38 = vld [vmem:[#allocation32_spill] sm:$0xff] }
 0x3f2   :  { %v928_v63 = vsel %vm79_vm7, %v916_v4, %v4290_v12  ;;  %v930_v25 = vsel %vm79_vm7, %v4291_v54, %v916_v4  ;;  %v925_v30 = vsel %vm79_vm7, %v4288_v43, %v922_v39  ;;  %v931_v16 = vsel %vm79_vm7, %v922_v39, %v4289_v35  ;;  %v4299_v4 = vld [vmem:[#allocation33_spill] sm:$0xff] }
 0x3f3   :  { %v938_v29 = vmul.f32 %v930_v25, %v4292_v49  ;;  %v939_v10 = vmul.f32 %v928_v63, %v4293_v20  ;;  %1383 = vmatpush1.bf16.msra.mxu0 %v1321_v3  ;;  %1423 = vmatprep.subr.bf16.mxu1 %v1324_v2  ;;  %v933_v19 = vmul.f32 %v931_v16, %v4294_v13  ;;  %v3939_v2 = vld [vmem:[%s4195_s1 + $0x20] ss:$0 sm:$0xff]  ;;  %v3945_v63 = vld [vmem:[%s4195_s1 + $0x28] ss:$0 sm:$0xff] }
 0x3f4   :  { %1424 = vmatpush1.bf16.msra.mxu1 %v1323_v46  ;;  %v936_v59 = vmul.f32 %v925_v30, %v4295_v61  ;;  %v4296_v46 = vld [vmem:[#allocation34_spill] sm:$0xff] }
 0x3f5   :  { %v1319_v40 = vpack.c.bf16 %v939_v10, %v935_v11  ;;  %v924_v27 = vpop.permute.xlu1 %923  ;;  %v1210_v33 = vpop.permute.xlu0 %1209  ;;  %v1318_v55 = vpack.c.bf16 %v938_v29, %v934_v9 }
 0x3f6   :  { %v926_v56 = vsel %vm79_vm7, %v4290_v12, %v924_v27  ;;  %v932_v1 = vsel %vm79_vm7, %v924_v27, %v4291_v54  ;;  %v1223_v62 = vsel %vm362_vm0, %v1210_v33, %v4296_v46  ;;  %v1225_v57 = vsel %vm362_vm0, %v4297_v38, %v1210_v33 }
 0x3f7   :  { %v937_v45 = vmul.f32 %v932_v1, %v4294_v13  ;;  %v940_v22 = vmul.f32 %v926_v56, %v4295_v61  ;;  %1384 = vmatprep.subr.bf16.mxu0 %v1318_v55  ;;  %v1229_v12 = vmul.f32 %v3939_v2, %v1225_v57  ;;  %v1230_v54 = vmul.f32 %v3945_v63, %v1223_v62  ;;  %v4300_v55 = vld [vmem:[#allocation23_spill] sm:$0xff]  ;;  %v3967_v1 = vld [vmem:[%s4195_s1 + $0x30] ss:$0 sm:$0xff] }
 0x3f8   :  { %v2577_v56 = vcombine.low %v4300_v55, %v4300_v55 }
 0x3f9   :  { %v1317_v0 = vpack.c.bf16 %v937_v45, %v933_v19  ;;  %v1212_v43 = vpop.permute.xlu1 %1211  ;;  %v1218_v15 = vpop.permute.xlu0 %1217  ;;  %v1320_v35 = vpack.c.bf16 %v940_v22, %v936_v59  ;;  %v3973_v19 = vld [vmem:[%s4195_s1 + $0x38] ss:$0 sm:$0xff] }
 0x3fa   :  { %v1224_v3 = vsel %vm362_vm0, %v1212_v43, %v4298_v44  ;;  %v1226_v39 = vsel %vm362_vm0, %v4299_v4, %v1212_v43  ;;  %v1221_v11 = vsel %vm362_vm0, %v4296_v46, %v1218_v15  ;;  %v1227_v29 = vsel %vm362_vm0, %v1218_v15, %v4297_v38 }
 0x3fb   :  { %v1233_v25 = vmul.f32 %v3939_v2, %v1226_v39  ;;  %v1234_v9 = vmul.f32 %v3945_v63, %v1224_v3  ;;  %1385 = vmatpush1.bf16.msra.mxu0 %v1317_v0  ;;  %1425 = vmatprep.subr.bf16.mxu1 %v1320_v35  ;;  %v1232_v59 = vmul.f32 %v3973_v19, %v1227_v29  ;;  %v4301_v38 = vmov 0  }
 0x3fc   :  { %1426 = vmatpush1.bf16.msra.mxu1 %v1319_v40  ;;  %v1231_v40 = vmul.f32 %v3967_v1, %v1221_v11 }
 0x3fd   :  { %v1349_v10 = vpack.c.bf16 %v1233_v25, %v1229_v12  ;;  %v1220_v30 = vpop.permute.xlu1 %1219  ;;  %v1350_v16 = vpack.c.bf16 %v1234_v9, %v1230_v54 }
 0x3fe   :  { %v1222_v27 = vsel %vm362_vm0, %v4298_v44, %v1220_v30  ;;  %v1228_v33 = vsel %vm362_vm0, %v1220_v30, %v4299_v4 }
 0x3ff   :  { %v1235_v45 = vmul.f32 %v3967_v1, %v1222_v27  ;;  %v1236_v22 = vmul.f32 %v3973_v19, %v1228_v33  ;;  %1400 = vmatprep.subr.bf16.mxu0 %v1350_v16  ;;  %v1681_v16 = vld [vmem:[%s4203_s9] sm:$0xf] }
 0x400   :  { %1401 = vmatpush2.bf16.msra.mxu0 %v1349_v10 }
 0x401   :  { %v1351_v46 = vpack.c.bf16 %v1235_v45, %v1231_v40  ;;  %v1352_v62 = vpack.c.bf16 %v1236_v22, %v1232_v59 }
 0x403   :  { %1403 = vmatmul.mubr.bf16.vlgmr.msra.gmra.mxu0 %v2577_v56  ;;  %1441 = vmatprep.subr.bf16.mxu1 %v1352_v62 }
 0x404   :  { %1442 = vmatpush2.bf16.msra.mxu1 %v1351_v46  ;;  %1734 = vmatprep.mubr.bf16.mxu0 %v4301_v38 }
 0x406   :  { %v1358_v57 = vpop.permute.xlu0 %1357 }
 0x407   :  { %1444 = vmatmul.mubr.bf16.vlgmr.msra.gmra.mxu1 %v2577_v56 }
 0x408   :  { %1775 = vmatprep.mubr.bf16.mxu1 %v4301_v38 }
 0x4c3   :  { %v1404_v0 = vpop.f32.mrf.mxu0 }
 0x4c4   :  { %v1405_v43 = vadd.f32 %v1404_v0, %v1358_v57 }
 0x4c5   :  { %v1406_v15 = vpop.f32.mrf.mxu0 }
 0x4c6   :  { %v3980_v35 = vmax.f32 %v1405_v43, 0.0  ;;  %v1407_v44 = vadd.f32 %v1406_v15, %v1358_v57 }
 0x4c7   :  { %v1408_v3 = vpop.f32.mrf.mxu0  ;;  %v1445_v4 = vpop.f32.mrf.mxu1 }
 0x4c8   :  { %v3982_v39 = vmax.f32 %v1407_v44, 0.0  ;;  %v1446_v12 = vadd.f32 %v1445_v4, %v1358_v57  ;;  %1604 = vrot.lane.b32.xlu1 %v3980_v35, %s2874_s14 }
 0x4c9   :  { %v1409_v54 = vpop.f32.mrf.mxu0  ;;  %v1447_v25 = vpop.f32.mrf.mxu1 }
 0x4ca   :  { %v3986_v9 = vmax.f32 %v1446_v12, 0.0  ;;  %v1448_v11 = vadd.f32 %v1447_v25, %v1358_v57  ;;  %1606 = vrot.lane.b32.xlu0 %v3982_v39, %s2874_s14 }
 0x4cb   :  { %v1449_v29 = vpop.f32.mrf.mxu1 }
 0x4cc   :  { %v3990_v10 = vmax.f32 %v1448_v11, 0.0  ;;  %1608 = vrot.lane.b32.xlu1 %v3986_v9, %s2874_s14 }
 0x4cd   :  { %v1450_v30 = vpop.f32.mrf.mxu1 }
 0x4ce   :  { %1610 = vrot.lane.b32.xlu0 %v3990_v10, %s2874_s14 }
 0x4d0   :  { %1564 = vrot.lane.b32.xlu1 %v3980_v35, %s2875_s18 }
 0x4d2   :  { %1566 = vrot.lane.b32.xlu0 %v3982_v39, %s2875_s18 }
 0x4d4   :  { %1568 = vrot.lane.b32.xlu1 %v3986_v9, %s2875_s18 }
 0x4d6   :  { %1570 = vrot.lane.b32.xlu0 %v3990_v10, %s2875_s18 }
 0x4d8   :  { %1584 = vrot.lane.b32.xlu1 %v3980_v35, %s2876_s0 }
 0x4da   :  { %1586 = vrot.lane.b32.xlu0 %v3982_v39, %s2876_s0 }
 0x4dc   :  { %1588 = vrot.lane.b32.xlu1 %v3986_v9, %s2876_s0 }
 0x4de   :  { %1590 = vrot.lane.b32.xlu0 %v3990_v10, %s2876_s0 }
 0x4e0   :  { %1544 = vrot.lane.b32.xlu1 %v3980_v35, %s2877_s19 }
 0x4e2   :  { %1546 = vrot.lane.b32.xlu0 %v3982_v39, %s2877_s19 }
 0x4e4   :  { %1548 = vrot.lane.b32.xlu1 %v3986_v9, %s2877_s19 }
 0x4e6   :  { %1550 = vrot.lane.b32.xlu0 %v3990_v10, %s2877_s19  ;;  %s2886_s19 = smov [#allocation6]  }
 0x4e8   :  { %1496 = vrot.lane.b32.xlu1 %v3980_v35, %s2878_s20 }
 0x4ea   :  { %1498 = vrot.lane.b32.xlu0 %v3982_v39, %s2878_s20 }
 0x4ec   :  { %1500 = vrot.lane.b32.xlu1 %v3986_v9, %s2878_s20 }
 0x4ee   :  { %1502 = vrot.lane.b32.xlu0 %v3990_v10, %s2878_s20  ;;  %s2555_s20 = sshll.u32 %s2886_s19, 4  ;;  %s2556_s20 = int_to_ptr.vmem [resolvable:$true] %s2555_s20 }
 0x4ef   :  { %p2852_p6 = scmp.lt.s32.totalorder %s2556_s20, %s2556_s20 }
 0x4f0   :  { %1516 = vrot.lane.b32.xlu1 %v3980_v35, %s2879_s21 }
 0x4f2   :  { %1518 = vrot.lane.b32.xlu0 %v3982_v39, %s2879_s21 }
 0x4f4   :  { %1520 = vrot.lane.b32.xlu1 %v3986_v9, %s2879_s21 }
 0x4f6   :  { %1522 = vrot.lane.b32.xlu0 %v3990_v10, %s2879_s21  ;;  %s2847_s21 = scalar_lea.vmem %s2556_s20, 32 }
 0x4f7   :  { %p2848_p5 = scmp.ne.s32.totalorder %s2556_s20, %s2847_s21  ;;  %p2853_p7 = scmp.lt.s32.totalorder %s2847_s21, %s2847_s21 }
 0x4f8   :  { %1456 = vrot.lane.b32.xlu1 %v3980_v35, %s2880_s22 }
 0x4f9   :  { %p2854_p8 = por %p2853_p7, %p2852_p6 }
 0x4fa   :  { %1458 = vrot.lane.b32.xlu0 %v3982_v39, %s2880_s22 }
 0x4fb   :  { %p2855_p9 = pnand %p2854_p8, %p2848_p5 }
 0x4fc   :  { %1460 = vrot.lane.b32.xlu1 %v3986_v9, %s2880_s22 }
 0x4fe   :  { %1462 = vrot.lane.b32.xlu0 %v3990_v10, %s2880_s22 }
 0x500   :  { %1476 = vrot.lane.b32.xlu1 %v3980_v35, %s2882_s23 }
 0x502   :  { %1478 = vrot.lane.b32.xlu0 %v3982_v39, %s2882_s23 }
 0x504   :  { %1480 = vrot.lane.b32.xlu1 %v3986_v9, %s2882_s23 }
 0x506   :  { %1482 = vrot.lane.b32.xlu0 %v3990_v10, %s2882_s23 }
 0x508   :  { %1684 = vperm.xlu1 %2755, %v1681_v16  }
 0x53a   :  { %v1605_v27 = vpop.permute.xlu1 %1604 }
 0x53c   :  { %v1607_v33 = vpop.permute.xlu0 %1606 }
 0x53d   :  { %v1614_v55 = vsel %vm362_vm0, %v1605_v27, %v1607_v33 }
 0x53e   :  { %v1616_v56 = vmul.f32 %v3939_v2, %v1614_v55  ;;  %v1609_v40 = vpop.permute.xlu1 %1608 }
 0x53f   :  { %v1613_v59 = vsel %vm362_vm0, %v1607_v33, %v1609_v40 }
 0x540   :  { %v1676_v45 = vpack.c.bf16 %v1616_v56, %v1616_v56  ;;  %v1617_v22 = vmul.f32 %v3945_v63, %v1613_v59  ;;  %v1611_v46 = vpop.permute.xlu0 %1610 }
 0x541   :  { %v1612_v62 = vsel %vm362_vm0, %v1609_v40, %v1611_v46  ;;  %v1615_v38 = vsel %vm362_vm0, %v1611_v46, %v1605_v27 }
 0x542   :  { %v1677_v57 = vpack.c.bf16 %v1617_v22, %v1617_v22  ;;  %v1618_v0 = vmul.f32 %v3967_v1, %v1612_v62  ;;  %v1619_v43 = vmul.f32 %v3973_v19, %v1615_v38  ;;  %v1565_v2 = vpop.permute.xlu1 %1564  ;;  %v1691_v63 = vsel %vm458_vm1, %v1676_v45, 0 }
 0x544   :  { %v1678_v15 = vpack.c.bf16 %v1618_v0, %v1618_v0  ;;  %v1679_v44 = vpack.c.bf16 %v1619_v43, %v1619_v43  ;;  %v1567_v3 = vpop.permute.xlu0 %1566  ;;  %2581 = vmatprep.subr.msk.bf16.mxu0 %vm458_vm1, %v1677_v57 }
 0x545   :  { %1709 = vmatpush1.bf16.msra.mxu0 %v1691_v63  ;;  %v1574_v29 = vsel %vm288_vm3, %v1565_v2, %v1567_v3  ;;  %v4302_v63 = vld [vmem:[#allocation10_spill] sm:$0xff] }
 0x546   :  { %2583 = vmatprep.subr.msk.bf16.mxu1 %vm458_vm1, %v1679_v44  ;;  %v1569_v4 = vpop.permute.xlu1 %1568  ;;  %v1697_v12 = vsel %vm458_vm1, %v1678_v15, 0  ;;  %v1576_v45 = vmul.f32 %v1574_v29, %v3139_v53 }
 0x547   :  { %1750 = vmatpush1.bf16.msra.mxu1 %v1697_v12  ;;  %v1573_v19 = vsel %vm288_vm3, %v1567_v3, %v1569_v4  ;;  %v1537_v3 = vmul.f32 %v3982_v39, %v3163_v17  ;;  %v4303_v12 = vld [vmem:[#allocation11_spill] sm:$0xff]  ;;  %v1539_v17 = vmul.f32 %v3990_v10, %v3166_v18 }
 0x548   :  { %v1571_v54 = vpop.permute.xlu0 %1570  ;;  %v1577_v56 = vmul.f32 %v1573_v19, %v3115_v42 }
 0x549   :  { %v1572_v30 = vsel %vm288_vm3, %v1569_v4, %v1571_v54  ;;  %v1575_v27 = vsel %vm288_vm3, %v1571_v54, %v1565_v2  ;;  %v1536_v4 = vmul.f32 %v3980_v35, %v4302_v63  ;;  %v1538_v54 = vmul.f32 %v3986_v9, %v4303_v12 }
 0x54a   :  { %v1585_v25 = vpop.permute.xlu1 %1584  ;;  %v1578_v22 = vmul.f32 %v1572_v30, %v3122_v47 }
 0x54c   :  { %v1587_v1 = vpop.permute.xlu0 %1586 }
 0x54d   :  { %v1594_v11 = vsel %vm325_vm2, %v1585_v25, %v1587_v1 }
 0x54e   :  { %v1589_v16 = vpop.permute.xlu1 %1588  ;;  %v1596_v33 = vmul.f32 %v1594_v11, %v3125_v48  ;;  %v1579_v48 = vmul.f32 %v1575_v27, %v3112_v41 }
 0x54f   :  { %v1593_v55 = vsel %vm325_vm2, %v1587_v1, %v1589_v16 }
 0x550   :  { %v1597_v40 = vmul.f32 %v1593_v55, %v3133_v51  ;;  %v1591_v59 = vpop.permute.xlu0 %1590  ;;  %v1672_v51 = vpack.c.bf16 %v1596_v33, %v1576_v45 }
 0x551   :  { %v1592_v46 = vsel %vm325_vm2, %v1589_v16, %v1591_v59  ;;  %v1595_v62 = vsel %vm325_vm2, %v1591_v59, %v1585_v25 }
 0x552   :  { %v1598_v38 = vmul.f32 %v1592_v46, %v3136_v52  ;;  %v1599_v57 = vmul.f32 %v1595_v62, %v3130_v50  ;;  %v1545_v42 = vpop.permute.xlu1 %1544  ;;  %v1673_v0 = vpack.c.bf16 %v1597_v40, %v1577_v56 }
 0x554   :  { %v1674_v43 = vpack.c.bf16 %v1598_v38, %v1578_v22  ;;  %v1547_v2 = vpop.permute.xlu0 %1546  ;;  %1710 = vmatprep.subr.bf16.mxu0 %v1673_v0  ;;  %v1675_v53 = vpack.c.bf16 %v1599_v57, %v1579_v48 }
 0x555   :  { %v1554_v47 = vsel %vm251_vm4, %v1545_v42, %v1547_v2  ;;  %1711 = vmatpush1.bf16.msra.mxu0 %v1672_v51 }
 0x556   :  { %1751 = vmatprep.subr.bf16.mxu1 %v1675_v53  ;;  %v1549_v15 = vpop.permute.xlu1 %1548  ;;  %v1556_v44 = vmul.f32 %v1554_v47, %v3175_v26 }
 0x557   :  { %v1553_v41 = vsel %vm251_vm4, %v1547_v2, %v1549_v15  ;;  %1752 = vmatpush1.bf16.msra.mxu1 %v1674_v43 }
 0x558   :  { %v1557_v50 = vmul.f32 %v1553_v41, %v3183_v31  ;;  %v1551_v52 = vpop.permute.xlu0 %1550  ;;  %v1668_v39 = vpack.c.bf16 %v1556_v44, %v1536_v4 }
 0x559   :  { %v1552_v25 = vsel %vm251_vm4, %v1549_v15, %v1551_v52  ;;  %v1555_v26 = vsel %vm251_vm4, %v1551_v52, %v1545_v42 }
 0x55a   :  { %v1558_v1 = vmul.f32 %v1552_v25, %v3186_v32  ;;  %v1559_v31 = vmul.f32 %v1555_v26, %v3178_v28  ;;  %v1497_v19 = vpop.permute.xlu1 %1496  ;;  %v1669_v11 = vpack.c.bf16 %v1557_v50, %v1537_v3 }
 0x55c   :  { %v1670_v35 = vpack.c.bf16 %v1558_v1, %v1538_v54  ;;  %v1499_v29 = vpop.permute.xlu0 %1498  ;;  %1712 = vmatprep.subr.bf16.mxu0 %v1669_v11  ;;  %v1671_v9 = vpack.c.bf16 %v1559_v31, %v1539_v17  ;;  %v2759_v11 = vld [vmem:[#allocation3 + $0x78] sm:$0xff]  }
 0x55d   :  { %1713 = vmatpush1.bf16.msra.mxu0 %v1668_v39  ;;  %v1506_v32 = vsel %vm153_vm5, %v1497_v19, %v1499_v29  ;;  %v2761_v39 = vld [vmem:[#allocation3 + $0xf8] sm:$0xff]  }
 0x55e   :  { %1753 = vmatprep.subr.bf16.mxu1 %v1671_v9  ;;  %v1501_v30 = vpop.permute.xlu1 %1500  ;;  %v1509_v18 = vmul.f32 %v1506_v32, %v3210_v5  ;;  %v2767_v9 = vld [vmem:[#allocation3 + $0x68] sm:$0xff]   ;;  %v2771_v32 = vld [vmem:[#allocation3 + $0x60] sm:$0xff]  }
 0x55f   :  { %1754 = vmatpush1.bf16.msra.mxu1 %v1670_v35  ;;  %v1505_v45 = vsel %vm153_vm5, %v1499_v29, %v1501_v30  ;;  %v2766_v29 = vld [vmem:[#allocation3 + $0xb0] sm:$0xff]  }
 0x560   :  { %v1503_v16 = vpop.permute.xlu0 %1502  ;;  %v1510_v51 = vmul.f32 %v1505_v45, %v4277_v8  ;;  %v2780_v45 = vld [vmem:[#allocation3 + $0x10] sm:$0xff]  }
 0x561   :  { %v1504_v56 = vsel %vm153_vm5, %v1501_v30, %v1503_v16  ;;  %v1507_v40 = vsel %vm153_vm5, %v1503_v16, %v1497_v19  ;;  %v2769_v30 = vld [vmem:[#allocation3 + $0xe8] sm:$0xff]  }
 0x562   :  { %v1517_v27 = vpop.permute.xlu1 %1516  ;;  %v1508_v48 = vmul.f32 %v1507_v40, %v4278_v36  ;;  %v1511_v38 = vmul.f32 %v1504_v56, %v4279_v14  ;;  %v2768_v16 = vld [vmem:[#allocation3 + $0x28] sm:$0xff]   ;;  %v2777_v56 = vld [vmem:[#allocation3 + $0xd8] sm:$0xff]  }
 0x563   :  { %v2778_v40 = vld [vmem:[#allocation3 + $0x98] sm:$0xff]  }
 0x564   :  { %v1519_v28 = vpop.permute.xlu0 %1518 }
 0x565   :  { %v1526_v33 = vsel %vm190_vm6, %v1517_v27, %v1519_v28 }
 0x566   :  { %v1529_v10 = vmul.f32 %v1526_v33, %v3214_v6  ;;  %v1521_v55 = vpop.permute.xlu1 %1520  ;;  %v2772_v33 = vld [vmem:[#allocation3 + $0x20] sm:$0xff]  }
 0x567   :  { %v1525_v59 = vsel %vm190_vm6, %v1519_v28, %v1521_v55  ;;  %v2773_v28 = vld [vmem:[#allocation3 + $0xe0] sm:$0xff]  }
 0x568   :  { %v1523_v22 = vpop.permute.xlu0 %1522  ;;  %v1665_v46 = vpack.c.bf16 %v1529_v10, %v1509_v18  ;;  %v1530_v62 = vmul.f32 %v1525_v59, %v3235_v24  ;;  %v2774_v18 = vld [vmem:[#allocation3 + $0xa0] sm:$0xff]   ;;  %v2775_v10 = vld [vmem:[#allocation3 + $0x58] sm:$0xff]   ;;  %v2779_v59 = vld [vmem:[#allocation3 + $0x50] sm:$0xff]  }
 0x569   :  { %v1524_v5 = vsel %vm190_vm6, %v1521_v55, %v1523_v22  ;;  %v1527_v6 = vsel %vm190_vm6, %v1523_v22, %v1517_v27  ;;  %v2770_v27 = vld [vmem:[#allocation3 + $0xa8] sm:$0xff]   ;;  %v2776_v55 = vld [vmem:[#allocation3 + $0x18] sm:$0xff]   ;;  %v2781_v22 = vld [vmem:[#allocation3 + $0xd0] sm:$0xff]  }
 0x56a   :  { %v1528_v57 = vmul.f32 %v1527_v6, %v3232_v23  ;;  %v1531_v42 = vmul.f32 %v1524_v5, %v3242_v34  ;;  %v1457_v0 = vpop.permute.xlu1 %1456  ;;  %1714 = vmatprep.subr.bf16.mxu0 %v1665_v46  ;;  %v1666_v53 = vpack.c.bf16 %v1530_v62, %v1510_v51  ;;  %v2782_v46 = vld [vmem:[#allocation3 + $0x90] sm:$0xff]   ;;  %v2783_v62 = vld [vmem:[#allocation3 + $0x48] sm:$0xff]   ;;  %v2791_v51 = vld [vmem:[#allocation3 + $0x178] sm:$0xff]  }
 0x56b   :  { %v2784_v5 = vld [vmem:[#allocation3 + $0x8] sm:$0xff]  }
 0x56c   :  { %v1664_v43 = vpack.c.bf16 %v1528_v57, %v1508_v48  ;;  %v1459_v24 = vpop.permute.xlu0 %1458  ;;  %v1667_v2 = vpack.c.bf16 %v1531_v42, %v1511_v38  ;;  %v2785_v6 = vld [vmem:[#allocation3 + $0xc8] sm:$0xff]   ;;  %v2787_v38 = vld [vmem:[#allocation3 + $0x40] sm:$0xff]  }
 0x56d   :  { %v1466_v14 = vsel %vm79_vm7, %v1457_v0, %v1459_v24  ;;  %v2786_v48 = vld [vmem:[#allocation3 + $0x88] sm:$0xff]   ;;  %v2788_v57 = vld [vmem:[#allocation3] sm:$0xff]  }
 0x56e   :  { %1755 = vmatprep.subr.bf16.mxu1 %v1667_v2  ;;  %v1461_v47 = vpop.permute.xlu1 %1460  ;;  %1715 = vmatpush1.bf16.msra.mxu0 %v1664_v43  ;;  %v1469_v44 = vmul.f32 %v1466_v14, %v4292_v49  ;;  %v2789_v42 = vld [vmem:[#allocation3 + $0xc0] sm:$0xff]   ;;  %v2793_v43 = vld [vmem:[#allocation3 + $0x1f8] sm:$0xff]  }
 0x56f   :  { %1756 = vmatpush1.bf16.msra.mxu1 %v1666_v53  ;;  %v1465_v63 = vsel %vm79_vm7, %v1459_v24, %v1461_v47  ;;  %v2883_v24 = vmov 1983009808  }
 0x570   :  { %v1463_v15 = vpop.permute.xlu0 %1462  ;;  %v1470_v19 = vmul.f32 %v1465_v63, %v4293_v20  ;;  %v2764_v20 = vld [vmem:[#allocation3 + $0x30] sm:$0xff]   ;;  %v1786_v2 = vunpack.c.l.s4 %v2883_v24  ;;  %v2810_v24 = vld [vmem:[#allocation3 + $0x198] sm:$0xff]  }
 0x571   :  { %v1464_v50 = vsel %vm79_vm7, %v1461_v47, %v1463_v15  ;;  %v1467_v52 = vsel %vm79_vm7, %v1463_v15, %v1457_v0  ;;  %v2790_v0 = vld [vmem:[#allocation3 + $0x80] sm:$0xff]   ;;  %v2884_v47 = vmov 1934713408  }
 0x572   :  { %v1477_v36 = vpop.permute.xlu1 %1476  ;;  %v1468_v25 = vmul.f32 %v1467_v52, %v4294_v13  ;;  %v1471_v26 = vmul.f32 %v1464_v50, %v4295_v61  ;;  %v2760_v13 = vld [vmem:[#allocation3 + $0x38] sm:$0xff]   ;;  %v2763_v61 = vld [vmem:[#allocation3 + $0x70] sm:$0xff]   ;;  %v1787_v53 = vunpack.c.0.s8 %v1786_v2  ;;  %v1803_v15 = vunpack.c.l.s4 %v2884_v47  ;;  %v2815_v47 = vld [vmem:[#allocation3 + $0x148] sm:$0xff]  }
 0x573   :  { %v2813_v2 = vld [vmem:[#allocation3 + $0x1d0] sm:$0xff]  }
 0x574   :  { %v1479_v23 = vpop.permute.xlu0 %1478  ;;  %v1804_v50 = vunpack.c.0.s8 %v1803_v15  ;;  %v2814_v15 = vld [vmem:[#allocation3 + $0x190] sm:$0xff]  }
 0x575   :  { %v1486_v34 = vsel %vm116_vm8, %v1477_v36, %v1479_v23 }
 0x576   :  { %v1489_v8 = vmul.f32 %v1486_v34, %v4284_v60  ;;  %v1481_v41 = vpop.permute.xlu1 %1480  ;;  %v4304_v34 = vld [vmem:[#allocation9_spill] sm:$0xff] }
 0x577   :  { %v1485_v3 = vsel %vm116_vm8, %v1479_v23, %v1481_v41 }
 0x578   :  { %v1483_v4 = vpop.permute.xlu0 %1482  ;;  %v1661_v12 = vpack.c.bf16 %v1489_v8, %v1469_v44  ;;  %v1490_v54 = vmul.f32 %v1485_v3, %v4285_v21  ;;  %v1790_v44 = vsub.s32 %v1787_v53, %v4304_v34  ;;  %v2812_v53 = vld [vmem:[#allocation3 + $0x110] sm:$0xff]  }
 0x579   :  { %v1484_v60 = vsel %vm116_vm8, %v1481_v41, %v1483_v4  ;;  %v1487_v49 = vsel %vm116_vm8, %v1483_v4, %v1477_v36 }
 0x57a   :  { %v1488_v1 = vmul.f32 %v1487_v49, %v4286_v58  ;;  %v1491_v31 = vmul.f32 %v1484_v60, %v4287_v37  ;;  %1716 = vmatprep.subr.bf16.mxu0 %v1661_v12  ;;  %v1662_v35 = vpack.c.bf16 %v1490_v54, %v1470_v19  ;;  %v2762_v58 = vld [vmem:[#allocation3 + $0xb8] sm:$0xff]   ;;  %v2765_v37 = vld [vmem:[#allocation3 + $0xf0] sm:$0xff]  }
 0x57c   :  { %v1660_v17 = vpack.c.bf16 %v1488_v1, %v1468_v25  ;;  %v1663_v21 = vpack.c.bf16 %v1491_v31, %v1471_v26  ;;  %v4174_v31 = vsub.s32 %v1804_v50, %v4304_v34  ;;  %v2819_v34 = vld [vmem:[#allocation3 + $0x140] sm:$0xff]  }
 0x57d   :  { %v2820_v50 = vld [vmem:[#allocation3 + $0x100] sm:$0xff]  }
 0x57e   :  { %1717 = vmatpush1.bf16.msra.mxu0 %v1660_v17  ;;  %1757 = vmatprep.subr.bf16.mxu1 %v1663_v21 }
 0x57f   :  { %1758 = vmatpush1.bf16.msra.mxu1 %v1662_v35  ;;  %2650 = vmatprep.subr.bf16.mxu0 %v2759_v11 }
 0x580   :  { %2672 = vmatprep.subr.bf16.mxu1 %v2761_v39 }
 0x581   :  { %2582 = vmatmul.mubr.msk.bf16.vlgmr.msra.gmra.mxu0 %vm454_vm9, %v1680_v7 }
 0x582   :  { %2584 = vmatmul.mubr.msk.bf16.vlgmr.msra.gmra.mxu1 %vm454_vm9, %v1680_v7  ;;  %2651 = vmatpush3.bf16.msra.mxu0 %v2760_v13 }
 0x583   :  { %2673 = vmatpush3.bf16.msra.mxu1 %v2762_v58  ;;  %2652 = vmatprep.subr.bf16.mxu0 %v2763_v61  ;;  %v1685_v36 = vpop.permute.xlu1 %1684 }
 0x584   :  { %2674 = vmatprep.subr.bf16.mxu1 %v2765_v37 }
 0x586   :  { %2653 = vmatpush3.bf16.msra.mxu0 %v2764_v20  ;;  %v2885_v20 = vmov 0.0  }
 0x587   :  { %2675 = vmatpush3.bf16.msra.mxu1 %v2766_v29  ;;  %2654 = vmatprep.subr.bf16.mxu0 %v2767_v9 }
 0x588   :  { %2676 = vmatprep.subr.bf16.mxu1 %v2769_v30  ;;  %v2792_v30 = vld [vmem:[#allocation3 + $0x138] sm:$0xff]  }
 0x58a   :  { %2655 = vmatpush3.bf16.msra.mxu0 %v2768_v16 }
 0x58b   :  { %2677 = vmatpush3.bf16.msra.mxu1 %v2770_v27  ;;  %2656 = vmatprep.subr.bf16.mxu0 %v2771_v32 }
 0x58c   :  { %2678 = vmatprep.subr.bf16.mxu1 %v2773_v28 }
 0x58e   :  { %2657 = vmatpush3.bf16.msra.mxu0 %v2772_v33  ;;  %v2794_v33 = vld [vmem:[#allocation3 + $0x1b8] sm:$0xff]  }
 0x58f   :  { %2679 = vmatpush3.bf16.msra.mxu1 %v2774_v18  ;;  %2658 = vmatprep.subr.bf16.mxu0 %v2775_v10  ;;  %v2795_v18 = vld [vmem:[#allocation3 + $0x170] sm:$0xff]  }
 0x590   :  { %2680 = vmatprep.subr.bf16.mxu1 %v2777_v56  ;;  %v2797_v56 = vld [vmem:[#allocation3 + $0x1f0] sm:$0xff]  }
 0x592   :  { %2659 = vmatpush3.bf16.msra.mxu0 %v2776_v55 }
 0x593   :  { %2681 = vmatpush3.bf16.msra.mxu1 %v2778_v40  ;;  %2660 = vmatprep.subr.bf16.mxu0 %v2779_v59  ;;  %v2796_v40 = vld [vmem:[#allocation3 + $0x130] sm:$0xff]  }
 0x594   :  { %2682 = vmatprep.subr.bf16.mxu1 %v2781_v22  ;;  %v2798_v22 = vld [vmem:[#allocation3 + $0x1b0] sm:$0xff]  }
 0x596   :  { %2661 = vmatpush3.bf16.msra.mxu0 %v2780_v45  ;;  %v2799_v45 = vld [vmem:[#allocation3 + $0x168] sm:$0xff]  }
 0x597   :  { %2683 = vmatpush3.bf16.msra.mxu1 %v2782_v46  ;;  %2662 = vmatprep.subr.bf16.mxu0 %v2783_v62  ;;  %v2801_v46 = vld [vmem:[#allocation3 + $0x1e8] sm:$0xff]  }
 0x598   :  { %2684 = vmatprep.subr.bf16.mxu1 %v2785_v6  ;;  %v2800_v62 = vld [vmem:[#allocation3 + $0x128] sm:$0xff]  }
 0x599   :  { %v2802_v6 = vld [vmem:[#allocation3 + $0x1a8] sm:$0xff]  }
 0x59a   :  { %2663 = vmatpush3.bf16.msra.mxu0 %v2784_v5  ;;  %v2803_v5 = vld [vmem:[#allocation3 + $0x160] sm:$0xff]  }
 0x59b   :  { %2685 = vmatpush3.bf16.msra.mxu1 %v2786_v48  ;;  %2664 = vmatprep.subr.bf16.mxu0 %v2787_v38  ;;  %v2805_v48 = vld [vmem:[#allocation3 + $0x1e0] sm:$0xff]  }
 0x59c   :  { %2686 = vmatprep.subr.bf16.mxu1 %v2789_v42  ;;  %v2804_v38 = vld [vmem:[#allocation3 + $0x120] sm:$0xff]  }
 0x59d   :  { %v2806_v42 = vld [vmem:[#allocation3 + $0x1a0] sm:$0xff]  }
 0x59e   :  { %2665 = vmatpush3.bf16.msra.mxu0 %v2788_v57  ;;  %v2807_v57 = vld [vmem:[#allocation3 + $0x158] sm:$0xff]  }
 0x59f   :  { %2687 = vmatpush3.bf16.msra.mxu1 %v2790_v0  ;;  %2694 = vmatprep.subr.bf16.mxu0 %v2791_v51  ;;  %v2809_v0 = vld [vmem:[#allocation3 + $0x1d8] sm:$0xff]  }
 0x5a0   :  { %2716 = vmatprep.subr.bf16.mxu1 %v2793_v43  ;;  %v2808_v51 = vld [vmem:[#allocation3 + $0x118] sm:$0xff]   ;;  %v2811_v43 = vld [vmem:[#allocation3 + $0x150] sm:$0xff]  }
 0x641   :  { %v1736_v14 = vpop.f32.mrf.mxu0 }
 0x642   :  { %v1737_v23 = vadd.f32 %v1736_v14, %v1685_v36  ;;  %v1777_v8 = vpop.f32.mrf.mxu1  ;;  %v2817_v14 = vld [vmem:[#allocation3 + $0x1c8] sm:$0xff]  }
 0x643   :  { %v1778_v41 = vadd.f32 %v1777_v8, %v1685_v36  ;;  %v1738_v52 = vpop.f32.mrf.mxu0 }
 0x644   :  { %v1784_v3 = vmax.f32 %v1737_v23, 0.0  ;;  %v1739_v63 = vadd.f32 %v1738_v52, %v1685_v36  ;;  %v1779_v4 = vpop.f32.mrf.mxu1  ;;  %v2816_v23 = vld [vmem:[#allocation3 + $0x108] sm:$0xff]   ;;  %v2822_v52 = vld [vmem:[#allocation3 + $0x180] sm:$0xff]  }
 0x645   :  { %v1792_v12 = vmax.f32 %v1778_v41, 0.0  ;;  %v1780_v54 = vadd.f32 %v1779_v4, %v1685_v36  ;;  %v1740_v60 = vpop.f32.mrf.mxu0  ;;  %v2821_v41 = vld [vmem:[#allocation3 + $0x1c0] sm:$0xff]  }
 0x646   :  { %v4169_v49 = vrot.slane %v1784_v3, %v1790_v44  ;;  %v1818_v25 = vmax.f32 %v1739_v63, 0.0  ;;  %v1781_v26 = vpop.f32.mrf.mxu1 }
 0x647   :  { %v4171_v1 = vrot.slane %v1792_v12, %v1790_v44  ;;  %v1826_v19 = vmax.f32 %v1780_v54, 0.0  ;;  %v1741_v11 = vpop.f32.mrf.mxu0 }
 0x648   :  { %v1825_v17 = vrot.slane %v1818_v25, %v1790_v44  ;;  %v1782_v21 = vpop.f32.mrf.mxu1 }
 0x649   :  { %v1800_v39 = vcombine.low %v4169_v49, %v4171_v1  ;;  %v1833_v35 = vrot.slane %v1826_v19, %v1790_v44  ;;  %v1801_v36 = vcombine.high %v4169_v49, %v4171_v1  ;;  %v2818_v44 = vld [vmem:[#allocation3 + $0x188] sm:$0xff]  }
 0x64b   :  { %v1808_v7 = vrot.slane %v1800_v39, %v4174_v31  ;;  %v1834_v13 = vcombine.low %v1825_v17, %v1833_v35  ;;  %v1835_v58 = vcombine.high %v1825_v17, %v1833_v35  ;;  %v1815_v8 = vrot.slane %v1801_v36, %v4174_v31 }
 0x64d   :  { %v1842_v61 = vrot.slane %v1834_v13, %v4174_v31  ;;  %v1849_v37 = vrot.slane %v1835_v58, %v4174_v31  ;;  %v1816_v29 = vcombine.high %v1808_v7, %v2885_v20  ;;  %v1852_v27 = vpack.c.bf16 %v1808_v7, %v1808_v7 }
 0x64e   :  { %v1817_v3 = vcombine.high %v1815_v8, %v2885_v20  ;;  %v1856_v63 = vpack.c.bf16 %v1815_v8, %v1815_v8 }
 0x64f   :  { %v1853_v9 = vpack.c.bf16 %v1842_v61, %v1842_v61  ;;  %v1850_v16 = vcombine.high %v1842_v61, %v2885_v20  ;;  %v1851_v32 = vcombine.high %v1849_v37, %v2885_v20  ;;  %v1857_v10 = vpack.c.bf16 %v1849_v37, %v1849_v37 }
 0x650   :  { %v1854_v55 = vpack.c.bf16 %v1816_v29, %v1816_v29  ;;  %v1858_v4 = vpack.c.bf16 %v1817_v3, %v1817_v3 }
 0x651   :  { %2116 = vmatprep.mubr.bf16.mxu0 %v1853_v9  ;;  %v1855_v28 = vpack.c.bf16 %v1850_v16, %v1850_v16  ;;  %v1859_v59 = vpack.c.bf16 %v1851_v32, %v1851_v32  ;;  %v2649_v32 = vld [vmem:[%s4205_s11] ss:$0 sm:$0xff] }
 0x652   :  { %2117 = vmatmul.mubr.bf16.vlgmr.msra.gmra.mxu0 %v1852_v27 }
 0x653   :  { %2695 = vmatpush3.bf16.msra.mxu0 %v2792_v30  ;;  %2252 = vmatprep.mubr.bf16.mxu1 %v1855_v28 }
 0x654   :  { %2388 = vmatprep.mubr.bf16.mxu0 %v1857_v10  ;;  %2253 = vmatmul.mubr.bf16.vlgmr.msra.gmra.mxu1 %v1854_v55 }
 0x655   :  { %2717 = vmatpush3.bf16.msra.mxu1 %v2794_v33  ;;  %2696 = vmatprep.subr.bf16.mxu0 %v2795_v18 }
 0x656   :  { %2524 = vmatprep.mubr.bf16.mxu1 %v1859_v59  ;;  %2718 = vmatprep.subr.bf16.mxu1 %v2797_v56 }
 0x657   :  { %2697 = vmatpush3.bf16.msra.mxu0 %v2796_v40 }
 0x658   :  { %2698 = vmatprep.subr.bf16.mxu0 %v2799_v45 }
 0x659   :  { %2719 = vmatpush3.bf16.msra.mxu1 %v2798_v22 }
 0x65a   :  { %2720 = vmatprep.subr.bf16.mxu1 %v2801_v46 }
 0x65b   :  { %2699 = vmatpush3.bf16.msra.mxu0 %v2800_v62 }
 0x65c   :  { %2700 = vmatprep.subr.bf16.mxu0 %v2803_v5 }
 0x65d   :  { %2721 = vmatpush3.bf16.msra.mxu1 %v2802_v6 }
 0x65e   :  { %2722 = vmatprep.subr.bf16.mxu1 %v2805_v48 }
 0x65f   :  { %2701 = vmatpush3.bf16.msra.mxu0 %v2804_v38 }
 0x660   :  { %2702 = vmatprep.subr.bf16.mxu0 %v2807_v57 }
 0x661   :  { %2723 = vmatpush3.bf16.msra.mxu1 %v2806_v42 }
 0x662   :  { %2724 = vmatprep.subr.bf16.mxu1 %v2809_v0 }
 0x663   :  { %2703 = vmatpush3.bf16.msra.mxu0 %v2808_v51 }
 0x664   :  { %2704 = vmatprep.subr.bf16.mxu0 %v2811_v43 }
 0x665   :  { %2725 = vmatpush3.bf16.msra.mxu1 %v2810_v24 }
 0x666   :  { %2726 = vmatprep.subr.bf16.mxu1 %v2813_v2 }
 0x667   :  { %2705 = vmatpush3.bf16.msra.mxu0 %v2812_v53 }
 0x668   :  { %2706 = vmatprep.subr.bf16.mxu0 %v2815_v47 }
 0x669   :  { %2727 = vmatpush3.bf16.msra.mxu1 %v2814_v15 }
 0x66a   :  { %2728 = vmatprep.subr.bf16.mxu1 %v2817_v14 }
 0x66b   :  { %2707 = vmatpush3.bf16.msra.mxu0 %v2816_v23 }
 0x66c   :  { %2708 = vmatprep.subr.bf16.mxu0 %v2819_v34 }
 0x66d   :  { %2729 = vmatpush3.bf16.msra.mxu1 %v2818_v44 }
 0x66e   :  { %2730 = vmatprep.subr.bf16.mxu1 %v2821_v41 }
 0x66f   :  { %2709 = vmatpush3.bf16.msra.mxu0 %v2820_v50 }
 0x671   :  { %2731 = vmatpush3.bf16.msra.mxu1 %v2822_v52 }
 0x672   :  { %2389 = vmatmul.mubr.bf16.vlgmr.msra.gmra.mxu0 %v1856_v63 }
 0x674   :  { %2525 = vmatmul.mubr.bf16.vlgmr.msra.gmra.mxu1 %v1858_v4 }
 0x712   :  { %v2666_v12 = vpop.f32.mrf.mxu0 }
 0x714   :  { %v2667_v54 = vpop.f32.mrf.mxu0  ;;  %v2688_v60 = vpop.f32.mrf.mxu1 }
 0x715   :  { %v2668_v11 = vadd.f32 %v2667_v54, %v2666_v12 }
 0x716   :  { %v2669_v49 = vpop.f32.mrf.mxu0  ;;  %v2689_v25 = vpop.f32.mrf.mxu1 }
 0x717   :  { %v2690_v19 = vadd.f32 %v2689_v25, %v2688_v60  ;;  %v2533_v7 = vsel %vm2532_vm11, %v2668_v11, 0.0 }
 0x718   :  { %v2670_v26 = vpop.f32.mrf.mxu0  ;;  %v2691_v1 = vpop.f32.mrf.mxu1 }
 0x719   :  { %v2534_v21 = vsel %vm2532_vm11, %v2690_v19, 0.0 }
 0x71a   :  { %v2692_v31 = vpop.f32.mrf.mxu1  ;;  %v2535_v58 = vadd.f32 %v2534_v21, %v2533_v7 }
 0x732   :  { %v2710_v17 = vpop.f32.mrf.mxu0 }
 0x734   :  { %v2711_v39 = vpop.f32.mrf.mxu0  ;;  %v2732_v35 = vpop.f32.mrf.mxu1 }
 0x735   :  { %v2712_v13 = vadd.f32 %v2711_v39, %v2710_v17 }
 0x736   :  { %v2713_v61 = vpop.f32.mrf.mxu0  ;;  %v2733_v37 = vpop.f32.mrf.mxu1 }
 0x737   :  { %v2536_v20 = vsel %vm2532_vm11, %v2712_v13, 0.0  ;;  %v2734_v29 = vadd.f32 %v2733_v37, %v2732_v35 }
 0x738   :  { %v2537_v9 = vadd.f32 %v2536_v20, %v2535_v58  ;;  %v2714_v30 = vpop.f32.mrf.mxu0  ;;  %v2735_v16 = vpop.f32.mrf.mxu1 }
 0x739   :  { %v2538_v27 = vsel %vm2532_vm11, %v2734_v29, 0.0 }
 0x73a   :  { %v2539_v28 = vadd.f32 %v2538_v27, %v2537_v9  ;;  %v2736_v33 = vpop.f32.mrf.mxu1 }
 0x73c   :  { %v2547_v18 = vadd.f32 %v2649_v32, %v2539_v28 }
 0x73e   :  { %2548 = vst [vmem:[#allocation6] sm:$0x3] %v2547_v18 }
 0x73f   :  { %2858 = shalt.err (!%p2855_p9)
}
 0x740   :  { %2558 = dma.vmem_to_hbm [thread:$0]  %s2556_s20, 32, %s4206_s12, [#allocation5]  }
 0x741   :  { %2869 = dma.done.wait [#allocation5], 32  }
 0x742   :  { %2870 = vsyncadd [#allocation5], 4294967264 }
 0x743   :  { %2562 = vsyncpa [#allocation4], 1 }
 0x744   :  { %2563 = vsyncpa [#allocation5], 1 }

</bundles_post_ra>
